<compile_context>
chip_gen: v5e
topology: v5e:2x2
jax: 0.10.0
libtpu: 0.0.40
codegen_flags: <defaults>
</compile_context>

<pallas_src>
from functools import partial

import jax
import jax.numpy as jnp
from jax.experimental import pallas as pl
from jax.experimental.pallas import tpu as pltpu

_LANE = 128


def _round_up(x, m):
    return ((x + m - 1) // m) * m


def _pad2(a, rows, cols):
    return jnp.pad(a, ((0, rows - a.shape[0]), (0, cols - a.shape[1])))


def _vmem_limit_bytes():
    """~80% of physical VMEM (generation-aware), 64 MiB fallback."""
    try:
        cap = int(pltpu.get_tpu_info().vmem_capacity_bytes)
    except Exception:
        cap = 64 * 1024 * 1024
    return max(32 * 1024 * 1024, int(cap * 0.8))


# ----------------------------------------------------------------------------
# Kernel 1: one 2-layer GCN branch per grid step (grid=(2,), branch parallel)
# ----------------------------------------------------------------------------
def _gcn2_kernel(x_ref, adj_ref, w1_ref, b1_ref, w2_ref, b2_ref, z_ref):
    mxu_dtype = w1_ref.dtype            # bf16 operands, f32 accumulation
    x = x_ref[...]                      # (Np, Fp)
    adj = adj_ref[...]                  # (Np, Np)

    s1 = jnp.dot(x, w1_ref[...], preferred_element_type=jnp.float32)
    h1 = jnp.dot(adj, s1.astype(mxu_dtype),
                 preferred_element_type=jnp.float32) + b1_ref[...]
    h1 = jnp.maximum(h1, 0.0)
    # TODO(synk): nn.Dropout(p=0.4) treated as identity (inference mode).
    s2 = jnp.dot(h1.astype(mxu_dtype), w2_ref[...],
                 preferred_element_type=jnp.float32)
    z_ref[...] = jnp.dot(adj, s2.astype(mxu_dtype),
                         preferred_element_type=jnp.float32) + b2_ref[...]


# ----------------------------------------------------------------------------
# Kernel 2: 2-way attention combine on the stacked [z_exec ; z_file] rows
# ----------------------------------------------------------------------------
def _attention_kernel(z2_ref, x2_ref, wpa_ref, wpb_ref, bp_ref, wq_ref,
                      z_ref, beta_ref):
    npad = z_ref.shape[0]
    mxu_dtype = wpa_ref.dtype

    z2 = z2_ref[...]                                     # (2Np, H3p) f32

    # Shared attention projection: cat([z, x], -1) @ Wp == z @ Wpa + x @ Wpb.
    h = jnp.tanh(
        jnp.dot(z2.astype(mxu_dtype), wpa_ref[...],
                preferred_element_type=jnp.float32)
        + jnp.dot(x2_ref[...], wpb_ref[...], preferred_element_type=jnp.float32)
        + bp_ref[...]
    )                                                    # (2Np, Ap) f32

    # score = h @ wq (single output column) as a VPU/XLU lane reduction.
    s = jnp.sum(h * wq_ref[...], axis=-1, keepdims=True)   # (2Np, 1)
    s_e = s[:npad]
    s_f = s[npad:]

    # numerically stable, exact 2-way softmax (O(N) elems -> division is free).
    m = jnp.maximum(s_e, s_f)
    e_e = jnp.exp(s_e - m)
    e_f = jnp.exp(s_f - m)
    r = pl.reciprocal(e_e + e_f, approx=False)
    b_e = e_e * r
    b_f = e_f * r

    z_ref[...] = b_e * z2[:npad] + b_f * z2[npad:]

    # lane-dense beta store: lanes 0/1 carry the weights, remaining lanes zero.
    lane = jax.lax.broadcasted_iota(jnp.int32, beta_ref.shape, 1)
    beta_ref[...] = jnp.where(lane == 0, b_e, jnp.where(lane == 1, b_f, 0.0))


# ----------------------------------------------------------------------------
# Wrapper
# ----------------------------------------------------------------------------
@partial(jax.jit, static_argnames=("mxu_dtype",))
def _forward(params, exec_x, exec_adj, file_x, file_adj, *, mxu_dtype):
    n, f = exec_x.shape
    h1 = params["exec_w1"].shape[1]
    h3 = params["exec_w2"].shape[1]
    a = params["att_bp"].shape[1]
    npad = _round_up(n, _LANE)
    fp, h1p, h3p, ap = (_round_up(d, _LANE) for d in (f, h1, h3, a))
    f32 = jnp.float32
    itemsize = jnp.dtype(mxu_dtype).itemsize

    # Layout plumbing: branch axis stacked as a leading dim of size 2
    # (exec=0, file=1); node rows zero-padded to a multiple of 128 (adj too);
    # lane dims zero-padded to 128.  Biases / wq stay f32.
    def stack2(a0, a1, rows, cols, dtype):
        return jnp.stack([_pad2(a0, rows, cols),
                          _pad2(a1, rows, cols)]).astype(dtype)

    xs = stack2(exec_x, file_x, npad, fp, mxu_dtype)             # (2, Np, Fp)
    adjs = stack2(exec_adj, file_adj, npad, npad, mxu_dtype)     # (2, Np, Np)
    w1s = stack2(params["exec_w1"], params["file_w1"], fp, h1p, mxu_dtype)
    b1s = stack2(params["exec_b1"], params["file_b1"], 1, h1p, f32)
    w2s = stack2(params["exec_w2"], params["file_w2"], h1p, h3p, mxu_dtype)
    b2s = stack2(params["exec_b2"], params["file_b2"], 1, h3p, f32)

    wpa = _pad2(params["att_wpa"], h3p, ap).astype(mxu_dtype)
    wpb = _pad2(params["att_wpb"], fp, ap).astype(mxu_dtype)
    bp = _pad2(params["att_bp"], 1, ap).astype(f32)
    wq = _pad2(params["att_wq"].T, 1, ap).astype(f32)            # (1, Ap)

    vmem_limit = _vmem_limit_bytes()

    # ---------------- call 1: both GCN branches, one per grid step ----------
    def bmap(b):
        return (b, 0, 0)

    gcn_in_bytes = ((xs.size + adjs.size + w1s.size + w2s.size) * itemsize
                    + (b1s.size + b2s.size) * 4)
    gcn_out_bytes = 2 * npad * h3p * 4
    gcn_flops = 2 * 2 * (npad * fp * h1p + npad * npad * h1p
                         + npad * h1p * h3p + npad * npad * h3p)

    zs = pl.pallas_call(
        _gcn2_kernel,
        out_shape=jax.ShapeDtypeStruct((2, npad, h3p), f32),
        grid=(2,),
        in_specs=[
            pl.BlockSpec((None, npad, fp), bmap),
            pl.BlockSpec((None, npad, npad), bmap),
            pl.BlockSpec((None, fp, h1p), bmap),
            pl.BlockSpec((None, 1, h1p), bmap),
            pl.BlockSpec((None, h1p, h3p), bmap),
            pl.BlockSpec((None, 1, h3p), bmap),
        ],
        out_specs=pl.BlockSpec((None, npad, h3p), bmap),
        compiler_params=pltpu.CompilerParams(
            dimension_semantics=("parallel",),     # v7x: one branch per TC
            vmem_limit_bytes=vmem_limit),
        cost_estimate=pl.CostEstimate(
            flops=gcn_flops, transcendentals=0,
            bytes_accessed=gcn_in_bytes + gcn_out_bytes),
    )(xs, adjs, w1s, b1s, w2s, b2s)                  # (2, Np, H3p) f32

    # ---------------- call 2: 2-way attention combine ------------------------
    z2 = zs.reshape(2 * npad, h3p)                    # free reshape (HBM view)
    x2 = xs.reshape(2 * npad, fp)

    att_in_bytes = (z2.size * 4 + x2.size * itemsize
                    + (wpa.size + wpb.size) * itemsize
                    + (bp.size + wq.size) * 4)
    att_out_bytes = (npad * h3p + npad * _LANE) * 4
    att_flops = 2 * (2 * npad * h3p * ap + 2 * npad * fp * ap) + 12 * npad * ap

    vmem_spec = pl.BlockSpec(memory_space=pltpu.MemorySpace.VMEM)
    z_pad, beta_pad = pl.pallas_call(
        _attention_kernel,
        out_shape=(jax.ShapeDtypeStruct((npad, h3p), f32),
                   jax.ShapeDtypeStruct((npad, _LANE), f32)),
        in_specs=[vmem_spec] * 6,
        out_specs=(vmem_spec, vmem_spec),
        compiler_params=pltpu.CompilerParams(vmem_limit_bytes=vmem_limit),
        cost_estimate=pl.CostEstimate(
            flops=att_flops,
            transcendentals=2 * npad * ap + 3 * npad,
            bytes_accessed=att_in_bytes + att_out_bytes),
    )(z2, x2, wpa, wpb, bp, wq)

    z = z_pad[:n, :h3]
    beta = beta_pad[:n, :2]
    z_exec = zs[0, :n, :h3]
    z_file = zs[1, :n, :h3]
    return z, beta, z_exec, z_file


def encoder_atten2_layer(params, exec_x, exec_adj, file_x, file_adj,
                         mxu_dtype=jnp.bfloat16):
    """Forward pass of EncoderAtten2Layer (mask=None path, inference mode).

    mxu_dtype: MXU operand dtype (default bf16 on all TPU generations; pass
    jnp.float32 if exact-parity accumulation of adj matmuls is required on
    very large graphs — bf16 quantization error grows ~sqrt(N)).
    """
    # TODO(synk): exec_mask_adj / file_mask_adj (data-dependent row gather) not
    # implemented; only the mask=None path of the PyTorch forward is covered.
    return _forward(params, exec_x, exec_adj, file_x, file_adj,
                    mxu_dtype=mxu_dtype)


# ----------------------------------------------------------------------------
# Parameters & pure-JAX reference
# ----------------------------------------------------------------------------
def init_params(key, gcn_feature, gcn_hid1, gcn_hid3):
    ks = jax.random.split(key, 12)
    att_hid = gcn_hid3 + gcn_feature
    s = 0.1
    return {
        "exec_w1": s * jax.random.normal(ks[0], (gcn_feature, gcn_hid1), jnp.float32),
        "exec_b1": s * jax.random.normal(ks[1], (1, gcn_hid1), jnp.float32),
        "exec_w2": s * jax.random.normal(ks[2], (gcn_hid1, gcn_hid3), jnp.float32),
        "exec_b2": s * jax.random.normal(ks[3], (1, gcn_hid3), jnp.float32),
        "file_w1": s * jax.random.normal(ks[4], (gcn_feature, gcn_hid1), jnp.float32),
        "file_b1": s * jax.random.normal(ks[5], (1, gcn_hid1), jnp.float32),
        "file_w2": s * jax.random.normal(ks[6], (gcn_hid1, gcn_hid3), jnp.float32),
        "file_b2": s * jax.random.normal(ks[7], (1, gcn_hid3), jnp.float32),
        # attention Linear(att_in, att_hid) split: z rows (Wpa) / x rows (Wpb).
        "att_wpa": s * jax.random.normal(ks[8], (gcn_hid3, att_hid), jnp.float32),
        "att_wpb": s * jax.random.normal(ks[9], (gcn_feature, att_hid), jnp.float32),
        "att_bp": s * jax.random.normal(ks[10], (1, att_hid), jnp.float32),
        "att_wq": s * jax.random.normal(ks[11], (att_hid, 1), jnp.float32),
    }


def _reference_forward(params, exec_x, exec_adj, file_x, file_adj):
    def gcn2(x, adj, w1, b1, w2, b2):
        h1 = jax.nn.relu(adj @ (x @ w1) + b1)
        return adj @ (h1 @ w2) + b2

    z_e = gcn2(exec_x, exec_adj, params["exec_w1"], params["exec_b1"],
               params["exec_w2"], params["exec_b2"])
    z_f = gcn2(file_x, file_adj, params["file_w1"], params["file_b1"],
               params["file_w2"], params["file_b2"])

    def score(z, x):
        h = jnp.tanh(z @ params["att_wpa"] + x @ params["att_wpb"] + params["att_bp"])
        return h @ params["att_wq"]

    s = jnp.concatenate([score(z_e, exec_x), score(z_f, file_x)], axis=1)
    beta = jax.nn.softmax(s, axis=1)
    z = beta[:, 0:1] * z_e + beta[:, 1:2] * z_f
    return z, beta, z_e, z_f


if __name__ == "__main__":
    key = jax.random.PRNGKey(0)
    N = 128           # nodes per graph
    GCN_FEATURE = 32
    GCN_HID1 = 32
    GCN_HID2 = 32     # unused by the module's forward (kept for fidelity)
    GCN_HID3 = 32

    kp, kx1, ka1, kx2, ka2 = jax.random.split(key, 5)
    params = init_params(kp, GCN_FEATURE, GCN_HID1, GCN_HID3)

    exec_x = jax.random.normal(kx1, (N, GCN_FEATURE), jnp.float32)
    file_x = jax.random.normal(kx2, (N, GCN_FEATURE), jnp.float32)
    a1 = jax.random.uniform(ka1, (N, N), jnp.float32)
    exec_adj = (a1 + a1.T) / (2.0 * N)
    a2 = jax.random.uniform(ka2, (N, N), jnp.float32)
    file_adj = (a2 + a2.T) / (2.0 * N)

    z, atten_weight, z_exec, z_file = encoder_atten2_layer(
        params, exec_x, exec_adj, file_x, file_adj
    )
    jax.block_until_ready((z, atten_weight, z_exec, z_file))

    assert z.shape == (N, GCN_HID3)
    assert atten_weight.shape == (N, 2)
    assert z_exec.shape == (N, GCN_HID3)
    assert z_file.shape == (N, GCN_HID3)
    # exact 2-way softmax -> rows sum to 1 tightly
    assert jnp.allclose(atten_weight.sum(axis=1), 1.0, atol=1e-3)

    # pure-JAX f32 reference (tolerances cover the bf16-operand MXU path)
    z_r, beta_r, ze_r, zf_r = _reference_forward(params, exec_x, exec_adj,
                                                 file_x, file_adj)
    tol = dict(atol=5e-2, rtol=5e-2)
    assert jnp.allclose(z_exec, ze_r, **tol)
    assert jnp.allclose(z_file, zf_r, **tol)
    assert jnp.allclose(atten_weight, beta_r, **tol)
    assert jnp.allclose(z, z_r, **tol)

    print("KERNEL_OK")
</pallas_src>

<mosaic_0001>
module attributes {stable_mosaic.version = 11 : i64} {
  func.func @_gcn2_kernel(%arg0: i32, %arg1: memref<1x128x128xbf16, #tpu.memory_space<vmem>>, %arg2: memref<1x128x128xbf16, #tpu.memory_space<vmem>>, %arg3: memref<1x128x128xbf16, #tpu.memory_space<vmem>>, %arg4: memref<1x1x128xf32, #tpu.memory_space<vmem>>, %arg5: memref<1x128x128xbf16, #tpu.memory_space<vmem>>, %arg6: memref<1x1x128xf32, #tpu.memory_space<vmem>>, %arg7: memref<1x128x128xf32, #tpu.memory_space<vmem>>) attributes {dimension_semantics = [#tpu.dimension_semantics<parallel>], iteration_bounds = array<i64: 2>, scalar_prefetch = 0 : i64, scratch_operands = 0 : i64, tpu.core_type = #tpu.core_type<tc>, window_params = [{transform_indices = @transform_0, window_bounds = array<i64: 1, 128, 128>}, {transform_indices = @transform_1, window_bounds = array<i64: 1, 128, 128>}, {transform_indices = @transform_2, window_bounds = array<i64: 1, 128, 128>}, {transform_indices = @transform_3, window_bounds = array<i64: 1, 1, 128>}, {transform_indices = @transform_4, window_bounds = array<i64: 1, 128, 128>}, {transform_indices = @transform_5, window_bounds = array<i64: 1, 1, 128>}, {transform_indices = @transform_6, window_bounds = array<i64: 1, 128, 128>}]} {
    %c0 = arith.constant 0 : index
    %c0_0 = arith.constant 0 : index
    %c0_1 = arith.constant 0 : index
    %0 = vector.load %arg1[%c0, %c0_0, %c0_1] : memref<1x128x128xbf16, #tpu.memory_space<vmem>>, vector<1x128x128xbf16>
    %1 = vector.shape_cast %0 : vector<1x128x128xbf16> to vector<128x128xbf16>
    %c0_2 = arith.constant 0 : index
    %c0_3 = arith.constant 0 : index
    %c0_4 = arith.constant 0 : index
    %2 = vector.load %arg2[%c0_2, %c0_3, %c0_4] : memref<1x128x128xbf16, #tpu.memory_space<vmem>>, vector<1x128x128xbf16>
    %3 = vector.shape_cast %2 : vector<1x128x128xbf16> to vector<128x128xbf16>
    %c0_5 = arith.constant 0 : index
    %c0_6 = arith.constant 0 : index
    %c0_7 = arith.constant 0 : index
    %4 = vector.load %arg3[%c0_5, %c0_6, %c0_7] : memref<1x128x128xbf16, #tpu.memory_space<vmem>>, vector<1x128x128xbf16>
    %5 = vector.shape_cast %4 : vector<1x128x128xbf16> to vector<128x128xbf16>
    %cst = arith.constant dense<0.000000e+00> : vector<128x128xf32>
    %6 = tpu.matmul %1, %5, %cst {dimension_numbers = #tpu.dot_dimension_numbers<[1], [0], [0], [1], [0, 0, 1, 1], [], []>} : vector<128x128xbf16>, vector<128x128xbf16>, vector<128x128xf32> -> vector<128x128xf32>
    %7 = arith.truncf %6 : vector<128x128xf32> to vector<128x128xbf16>
    %cst_8 = arith.constant dense<0.000000e+00> : vector<128x128xf32>
    %8 = tpu.matmul %3, %7, %cst_8 {dimension_numbers = #tpu.dot_dimension_numbers<[1], [0], [0], [1], [0, 0, 1, 1], [], []>} : vector<128x128xbf16>, vector<128x128xbf16>, vector<128x128xf32> -> vector<128x128xf32>
    %c0_9 = arith.constant 0 : index
    %c0_10 = arith.constant 0 : index
    %c0_11 = arith.constant 0 : index
    %9 = vector.load %arg4[%c0_9, %c0_10, %c0_11] : memref<1x1x128xf32, #tpu.memory_space<vmem>>, vector<1x1x128xf32>
    %10 = vector.shape_cast %9 : vector<1x1x128xf32> to vector<1x128xf32>
    %11 = vector.broadcast %10 : vector<1x128xf32> to vector<128x128xf32>
    %12 = arith.addf %8, %11 : vector<128x128xf32>
    %cst_12 = arith.constant 0.000000e+00 : f32
    %13 = vector.broadcast %cst_12 : f32 to vector<128x128xf32>
    %14 = arith.maximumf %12, %13 : vector<128x128xf32>
    %15 = arith.truncf %14 : vector<128x128xf32> to vector<128x128xbf16>
    %c0_13 = arith.constant 0 : index
    %c0_14 = arith.constant 0 : index
    %c0_15 = arith.constant 0 : index
    %16 = vector.load %arg5[%c0_13, %c0_14, %c0_15] : memref<1x128x128xbf16, #tpu.memory_space<vmem>>, vector<1x128x128xbf16>
    %17 = vector.shape_cast %16 : vector<1x128x128xbf16> to vector<128x128xbf16>
    %cst_16 = arith.constant dense<0.000000e+00> : vector<128x128xf32>
    %18 = tpu.matmul %15, %17, %cst_16 {dimension_numbers = #tpu.dot_dimension_numbers<[1], [0], [0], [1], [0, 0, 1, 1], [], []>} : vector<128x128xbf16>, vector<128x128xbf16>, vector<128x128xf32> -> vector<128x128xf32>
    %19 = arith.truncf %18 : vector<128x128xf32> to vector<128x128xbf16>
    %cst_17 = arith.constant dense<0.000000e+00> : vector<128x128xf32>
    %20 = tpu.matmul %3, %19, %cst_17 {dimension_numbers = #tpu.dot_dimension_numbers<[1], [0], [0], [1], [0, 0, 1, 1], [], []>} : vector<128x128xbf16>, vector<128x128xbf16>, vector<128x128xf32> -> vector<128x128xf32>
    %c0_18 = arith.constant 0 : index
    %c0_19 = arith.constant 0 : index
    %c0_20 = arith.constant 0 : index
    %21 = vector.load %arg6[%c0_18, %c0_19, %c0_20] : memref<1x1x128xf32, #tpu.memory_space<vmem>>, vector<1x1x128xf32>
    %22 = vector.shape_cast %21 : vector<1x1x128xf32> to vector<1x128xf32>
    %23 = vector.broadcast %22 : vector<1x128xf32> to vector<128x128xf32>
    %24 = arith.addf %20, %23 : vector<128x128xf32>
    %c0_21 = arith.constant 0 : index
    %c0_22 = arith.constant 0 : index
    %c0_23 = arith.constant 0 : index
    %25 = vector.load %arg7[%c0_21, %c0_22, %c0_23] : memref<1x128x128xf32, #tpu.memory_space<vmem>>, vector<1x128x128xf32>
    %26 = vector.shape_cast %25 : vector<1x128x128xf32> to vector<128x128xf32>
    %27 = vector.shape_cast %24 : vector<128x128xf32> to vector<1x128x128xf32>
    tpu.vector_store %arg7[%c0_21, %c0_22, %c0_23], %27 {strides = array<i32>} : memref<1x128x128xf32, #tpu.memory_space<vmem>>, vector<1x128x128xf32>,
    return
  }
  func.func @transform_0(%arg0: i32) -> (i32, i32, i32) {
    %c0_i32 = arith.constant 0 : i32
    %c0_i32_0 = arith.constant 0 : i32
    %c0_i32_1 = arith.constant 0 : i32
    return %arg0, %c0_i32, %c0_i32_0 : i32, i32, i32
  }
  func.func @transform_1(%arg0: i32) -> (i32, i32, i32) {
    %c0_i32 = arith.constant 0 : i32
    %c0_i32_0 = arith.constant 0 : i32
    %c0_i32_1 = arith.constant 0 : i32
    return %arg0, %c0_i32, %c0_i32_0 : i32, i32, i32
  }
  func.func @transform_2(%arg0: i32) -> (i32, i32, i32) {
    %c0_i32 = arith.constant 0 : i32
    %c0_i32_0 = arith.constant 0 : i32
    %c0_i32_1 = arith.constant 0 : i32
    return %arg0, %c0_i32, %c0_i32_0 : i32, i32, i32
  }
  func.func @transform_3(%arg0: i32) -> (i32, i32, i32) {
    %c0_i32 = arith.constant 0 : i32
    %c0_i32_0 = arith.constant 0 : i32
    %c0_i32_1 = arith.constant 0 : i32
    return %arg0, %c0_i32, %c0_i32_0 : i32, i32, i32
  }
  func.func @transform_4(%arg0: i32) -> (i32, i32, i32) {
    %c0_i32 = arith.constant 0 : i32
    %c0_i32_0 = arith.constant 0 : i32
    %c0_i32_1 = arith.constant 0 : i32
    return %arg0, %c0_i32, %c0_i32_0 : i32, i32, i32
  }
  func.func @transform_5(%arg0: i32) -> (i32, i32, i32) {
    %c0_i32 = arith.constant 0 : i32
    %c0_i32_0 = arith.constant 0 : i32
    %c0_i32_1 = arith.constant 0 : i32
    return %arg0, %c0_i32, %c0_i32_0 : i32, i32, i32
  }
  func.func @transform_6(%arg0: i32) -> (i32, i32, i32) {
    %c0_i32 = arith.constant 0 : i32
    %c0_i32_0 = arith.constant 0 : i32
    %c0_i32_1 = arith.constant 0 : i32
    return %arg0, %c0_i32, %c0_i32_0 : i32, i32, i32
  }
}

module attributes {stable_mosaic.version = 11 : i64} {
  func.func @_attention_kernel(%arg0: memref<256x128xf32, #tpu.memory_space<vmem>>, %arg1: memref<256x128xbf16, #tpu.memory_space<vmem>>, %arg2: memref<128x128xbf16, #tpu.memory_space<vmem>>, %arg3: memref<128x128xbf16, #tpu.memory_space<vmem>>, %arg4: memref<1x128xf32, #tpu.memory_space<vmem>>, %arg5: memref<1x128xf32, #tpu.memory_space<vmem>>, %arg6: memref<128x128xf32, #tpu.memory_space<vmem>>, %arg7: memref<128x128xf32, #tpu.memory_space<vmem>>) attributes {dimension_semantics = [], scalar_prefetch = 0 : i64, scratch_operands = 0 : i64, tpu.core_type = #tpu.core_type<tc>} {
    %c0 = arith.constant 0 : index
    %c0_0 = arith.constant 0 : index
    %0 = vector.load %arg0[%c0, %c0_0] : memref<256x128xf32, #tpu.memory_space<vmem>>, vector<256x128xf32>
    %1 = arith.truncf %0 : vector<256x128xf32> to vector<256x128xbf16>
    %c0_1 = arith.constant 0 : index
    %c0_2 = arith.constant 0 : index
    %2 = vector.load %arg2[%c0_1, %c0_2] : memref<128x128xbf16, #tpu.memory_space<vmem>>, vector<128x128xbf16>
    %cst = arith.constant dense<0.000000e+00> : vector<256x128xf32>
    %3 = tpu.matmul %1, %2, %cst {dimension_numbers = #tpu.dot_dimension_numbers<[1], [0], [0], [1], [0, 0, 1, 1], [], []>} : vector<256x128xbf16>, vector<128x128xbf16>, vector<256x128xf32> -> vector<256x128xf32>
    %c0_3 = arith.constant 0 : index
    %c0_4 = arith.constant 0 : index
    %4 = vector.load %arg1[%c0_3, %c0_4] : memref<256x128xbf16, #tpu.memory_space<vmem>>, vector<256x128xbf16>
    %c0_5 = arith.constant 0 : index
    %c0_6 = arith.constant 0 : index
    %5 = vector.load %arg3[%c0_5, %c0_6] : memref<128x128xbf16, #tpu.memory_space<vmem>>, vector<128x128xbf16>
    %cst_7 = arith.constant dense<0.000000e+00> : vector<256x128xf32>
    %6 = tpu.matmul %4, %5, %cst_7 {dimension_numbers = #tpu.dot_dimension_numbers<[1], [0], [0], [1], [0, 0, 1, 1], [], []>} : vector<256x128xbf16>, vector<128x128xbf16>, vector<256x128xf32> -> vector<256x128xf32>
    %7 = arith.addf %3, %6 : vector<256x128xf32>
    %c0_8 = arith.constant 0 : index
    %c0_9 = arith.constant 0 : index
    %8 = vector.load %arg4[%c0_8, %c0_9] : memref<1x128xf32, #tpu.memory_space<vmem>>, vector<1x128xf32>
    %9 = vector.broadcast %8 : vector<1x128xf32> to vector<256x128xf32>
    %10 = arith.addf %7, %9 : vector<256x128xf32>
    %11 = math.tanh %10 : vector<256x128xf32>
    %c0_10 = arith.constant 0 : index
    %c0_11 = arith.constant 0 : index
    %12 = vector.load %arg5[%c0_10, %c0_11] : memref<1x128xf32, #tpu.memory_space<vmem>>, vector<1x128xf32>
    %13 = vector.broadcast %12 : vector<1x128xf32> to vector<256x128xf32>
    %14 = arith.mulf %11, %13 : vector<256x128xf32>
    %cst_12 = arith.constant dense<0.000000e+00> : vector<256xf32>
    %15 = vector.multi_reduction <add>, %14, %cst_12 [1] : vector<256x128xf32> to vector<256xf32>
    %16 = vector.shape_cast %15 : vector<256xf32> to vector<256x1xf32>
    %17 = vector.extract_strided_slice %16 {offsets = [0, 0], sizes = [128, 1], strides = [1, 1]} : vector<256x1xf32> to vector<128x1xf32>
    %18 = vector.extract_strided_slice %16 {offsets = [128, 0], sizes = [128, 1], strides = [1, 1]} : vector<256x1xf32> to vector<128x1xf32>
    %19 = arith.maximumf %17, %18 : vector<128x1xf32>
    %20 = arith.subf %17, %19 : vector<128x1xf32>
    %21 = math.exp %20 : vector<128x1xf32>
    %22 = arith.subf %18, %19 : vector<128x1xf32>
    %23 = math.exp %22 : vector<128x1xf32>
    %24 = arith.addf %21, %23 : vector<128x1xf32>
    %25 = tpu.reciprocal %24 : vector<128x1xf32> -> vector<128x1xf32>
    %26 = arith.mulf %21, %25 : vector<128x1xf32>
    %27 = arith.mulf %23, %25 : vector<128x1xf32>
    %28 = vector.extract_strided_slice %0 {offsets = [0, 0], sizes = [128, 128], strides = [1, 1]} : vector<256x128xf32> to vector<128x128xf32>
    %29 = vector.broadcast %26 : vector<128x1xf32> to vector<128x128xf32>
    %30 = arith.mulf %29, %28 : vector<128x128xf32>
    %31 = vector.extract_strided_slice %0 {offsets = [128, 0], sizes = [128, 128], strides = [1, 1]} : vector<256x128xf32> to vector<128x128xf32>
    %32 = vector.broadcast %27 : vector<128x1xf32> to vector<128x128xf32>
    %33 = arith.mulf %32, %31 : vector<128x128xf32>
    %34 = arith.addf %30, %33 : vector<128x128xf32>
    %c0_13 = arith.constant 0 : index
    %c0_14 = arith.constant 0 : index
    %35 = vector.load %arg6[%c0_13, %c0_14] : memref<128x128xf32, #tpu.memory_space<vmem>>, vector<128x128xf32>
    tpu.vector_store %arg6[%c0_13, %c0_14], %34 {strides = array<i32>} : memref<128x128xf32, #tpu.memory_space<vmem>>, vector<128x128xf32>,
    %36 = tpu.iota {dimensions = array<i32: 1>} : vector<128x128xi32>
    %c0_i32 = arith.constant 0 : i32
    %37 = vector.broadcast %c0_i32 : i32 to vector<128x128xi32>
    %38 = arith.cmpi eq, %36, %37 : vector<128x128xi32>
    %c1_i32 = arith.constant 1 : i32
    %39 = vector.broadcast %c1_i32 : i32 to vector<128x128xi32>
    %40 = arith.cmpi eq, %36, %39 : vector<128x128xi32>
    %cst_15 = arith.constant 0.000000e+00 : f32
    %41 = vector.shape_cast %27 : vector<128x1xf32> to vector<128x1xf32>
    %42 = vector.broadcast %41 : vector<128x1xf32> to vector<128x128xf32>
    %43 = vector.broadcast %cst_15 : f32 to vector<128x128xf32>
    %44 = arith.select %40, %42, %43 : vector<128x128xi1>, vector<128x128xf32>
    %45 = vector.shape_cast %26 : vector<128x1xf32> to vector<128x1xf32>
    %46 = vector.broadcast %45 : vector<128x1xf32> to vector<128x128xf32>
    %47 = arith.select %38, %46, %44 : vector<128x128xi1>, vector<128x128xf32>
    %c0_16 = arith.constant 0 : index
    %c0_17 = arith.constant 0 : index
    %48 = vector.load %arg7[%c0_16, %c0_17] : memref<128x128xf32, #tpu.memory_space<vmem>>, vector<128x128xf32>
    tpu.vector_store %arg7[%c0_16, %c0_17], %47 {strides = array<i32>} : memref<128x128xf32, #tpu.memory_space<vmem>>, vector<128x128xf32>,
    return
  }
}

</mosaic_0001>

<bundles_post_ra>
// kernel: _forward.2
= control target key start
LH: loop header
LB: loop body
LE: loop exit
PB: predicated region body
PF: predicated region fallthrough
CT: control target
= control target key end

     0   :  { %s1200_s21 = smov 0   ;;  %s1309_s0 = inlined_call_operand.vmem [shape: bf16[2,128,128], index: 0, kind: input, shape index: {}]   ;;  %s1310_s1 = inlined_call_operand.vmem [shape: bf16[2,128,128], index: 1, kind: input, shape index: {}]   ;;  %s1311_s2 = inlined_call_operand.vmem [shape: bf16[2,128,128], index: 2, kind: input, shape index: {}]   ;;  %s1312_s3 = inlined_call_operand.vmem [shape: f32[2,1,128], index: 3, kind: input, shape index: {}]   ;;  %s1313_s4 = inlined_call_operand.vmem [shape: bf16[2,128,128], index: 4, kind: input, shape index: {}]   ;;  %s1314_s5 = inlined_call_operand.vmem [shape: f32[2,1,128], index: 5, kind: input, shape index: {}]   ;;  %s1315_s6 = inlined_call_operand.vmem [shape: f32[2,128,128], index: 6, kind: output, shape index: {}]  }
   0x1 LB: > { %s965_s22 = sadd.s32 4294967295, %s1163_s21   ;;  %p969_p0 = scmp.ge.s32.totalorder %s1163_s21, 1  ;;  %s1163_s21 = sphi %s1200_s21, %s16_s21  }
   0x2   : > { %p258_p1 = scmp.lt.s32.totalorder %s1163_s21, 3 }
   0x4   : > { %p259_p2 = pnand %p969_p0, %p258_p1 }
   0x5   : > { %p309_p3 = scmp.lt.s32.totalorder (!%p259_p2), %s965_s22, 1 }
   0x6   : > { %262 = sbr.rel (%p259_p2) target bundleno = 1005 (0x3ed), region = 44 }
   0xb   : > { %s1317_s22 = smov (!%p309_p3, %s965_s22), 1 }
   0xc   : > { %s1211_s23 = sshll.u32 %s1317_s22, 6  ;;  %s326_s8 = scalar_lea.vmem %s1312_s3, %s1317_s22 }
   0xd   : > { %s323_s26 = scalar_lea.vmem %s1311_s2, %s1211_s23  ;;  %s313_s29 = scalar_lea.vmem %s1309_s0, %s1211_s23  ;;  %v1155_v57 = vld [vmem:[%s326_s8] ss:$0 sm:$0xff] }
   0xe   : > { %v1138_v0 = vld [vmem:[%s323_s26 + $0x38] sm:$0xff]  ;;  %v1137_v1 = vld [vmem:[%s323_s26 + $0x30] sm:$0xff]  ;;  %v1136_v2 = vld [vmem:[%s323_s26 + $0x28] sm:$0xff]  ;;  %s1229_s11 = scalar_lea.vmem %s1310_s1, %s1211_s23  ;;  %s331_s14 = scalar_lea.vmem %s1313_s4, %s1211_s23 }
   0xf   : > { %484 = vmatpush.bf16.msra.mxu0 %v1138_v0  ;;  %v1135_v3 = vld [vmem:[%s323_s26 + $0x20] sm:$0xff]  ;;  %v1134_v4 = vld [vmem:[%s323_s26 + $0x18] sm:$0xff]  ;;  %v1133_v5 = vld [vmem:[%s323_s26 + $0x10] sm:$0xff]  ;;  %s334_s19 = scalar_lea.vmem %s1314_s5, %s1317_s22  ;;  %s1114_s20 = sshll.u32 %s1317_s22, 7 }
  0x10   : > { %v1132_v6 = vld [vmem:[%s323_s26 + $0x8] sm:$0xff]  ;;  %v1131_v7 = vld [vmem:[%s323_s26] sm:$0xff]  ;;  %v1117_v10 = vld [vmem:[%s313_s29 + $0x10] sm:$0xff]  ;;  %s1288_s25 = scalar_lea.vmem %s1315_s6, %s1114_s20 }
  0x11   : > { %v1115_v8 = vld [vmem:[%s313_s29] sm:$0xff]  ;;  %v1116_v9 = vld [vmem:[%s313_s29 + $0x8] sm:$0xff]  ;;  %v1118_v11 = vld [vmem:[%s313_s29 + $0x18] sm:$0xff] }
  0x12   : > { %v1119_v12 = vld [vmem:[%s313_s29 + $0x20] sm:$0xff]  ;;  %v1120_v13 = vld [vmem:[%s313_s29 + $0x28] sm:$0xff]  ;;  %v1121_v14 = vld [vmem:[%s313_s29 + $0x30] sm:$0xff] }
  0x13   : > { %485 = vmatpush.bf16.msra.mxu0 %v1137_v1  ;;  %v1122_v15 = vld [vmem:[%s313_s29 + $0x38] sm:$0xff]  ;;  %v1232_v40 = vld [vmem:[%s1229_s11] sm:$0xff]  ;;  %v1236_v41 = vld [vmem:[%s1229_s11 + $0x8] sm:$0xff] }
  0x14   : > { %v1240_v42 = vld [vmem:[%s1229_s11 + $0x10] sm:$0xff]  ;;  %v1244_v43 = vld [vmem:[%s1229_s11 + $0x18] sm:$0xff]  ;;  %v1248_v44 = vld [vmem:[%s1229_s11 + $0x20] sm:$0xff] }
  0x15   : > { %v1146_v45 = vld [vmem:[%s331_s14 + $0x38] sm:$0xff]  ;;  %v1256_v46 = vld [vmem:[%s1229_s11 + $0x28] sm:$0xff]  ;;  %v1145_v47 = vld [vmem:[%s331_s14 + $0x30] sm:$0xff] }
  0x16   : > { %730 = vmatpush.bf16.msra.mxu2 %v1146_v45  ;;  %v1144_v48 = vld [vmem:[%s331_s14 + $0x28] sm:$0xff]  ;;  %v1143_v49 = vld [vmem:[%s331_s14 + $0x20] sm:$0xff]  ;;  %v1142_v50 = vld [vmem:[%s331_s14 + $0x18] sm:$0xff] }
  0x17   : > { %486 = vmatpush.bf16.msra.mxu0 %v1136_v2  ;;  %v1260_v51 = vld [vmem:[%s1229_s11 + $0x30] sm:$0xff]  ;;  %v1140_v53 = vld [vmem:[%s331_s14 + $0x8] sm:$0xff]  ;;  %v1139_v54 = vld [vmem:[%s331_s14] sm:$0xff] }
  0x18   : > { %v1141_v52 = vld [vmem:[%s331_s14 + $0x10] sm:$0xff]  ;;  %v1264_v55 = vld [vmem:[%s1229_s11 + $0x38] sm:$0xff] }
  0x1a   : > { %731 = vmatpush.bf16.msra.mxu2 %v1145_v47 }
  0x1b   : > { %487 = vmatpush.bf16.msra.mxu0 %v1135_v3 }
  0x1e   : > { %732 = vmatpush.bf16.msra.mxu2 %v1144_v48 }
  0x1f   : > { %488 = vmatpush.bf16.msra.mxu0 %v1134_v4 }
  0x22   : > { %733 = vmatpush.bf16.msra.mxu2 %v1143_v49 }
  0x23   : > { %489 = vmatpush.bf16.msra.mxu0 %v1133_v5 }
  0x26   : > { %734 = vmatpush.bf16.msra.mxu2 %v1142_v50 }
  0x27   : > { %490 = vmatpush.bf16.msra.mxu0 %v1132_v6 }
  0x2a   : > { %735 = vmatpush.bf16.msra.mxu2 %v1141_v52 }
  0x2b   : > { %491 = vmatpush.bf16.msra.mxu0 %v1131_v7 }
  0x2e   : > { %492 = vmatmul.bf16.vlgmr.msra.gmra.mxu0 %v1115_v8  ;;  %736 = vmatpush.bf16.msra.mxu2 %v1140_v53 }
  0x32   : > { %737 = vmatpush.bf16.msra.mxu2 %v1139_v54 }
  0x3e   : > { %497 = vmatmul.bf16.gmra.mxu0 %v1116_v9 }
  0x4e   : > { %502 = vmatmul.bf16.gmra.mxu0 %v1117_v10 }
  0x5e   : > { %507 = vmatmul.bf16.gmra.mxu0 %v1118_v11 }
  0x6e   : > { %512 = vmatmul.bf16.gmra.mxu0 %v1119_v12 }
  0x7e   : > { %517 = vmatmul.bf16.gmra.mxu0 %v1120_v13 }
  0x8e   : > { %522 = vmatmul.bf16.gmra.mxu0 %v1121_v14 }
  0x9e   : > { %527 = vmatmul.bf16.gmra.mxu0 %v1122_v15 }
  0xab   : > { %v493_v16 = vpop.f32.mrf.mxu0 }
  0xb3   : > { %v495_v17 = vpop.f32.mrf.mxu0 }
  0xb4   : > { %v533_v18 = vpack.c.bf16 %v495_v17, %v493_v16 }
  0xbb   : > { %v498_v19 = vpop.f32.mrf.mxu0 }
  0xc3   : > { %v500_v20 = vpop.f32.mrf.mxu0 }
  0xc4   : > { %v534_v21 = vpack.c.bf16 %v500_v20, %v498_v19 }
  0xcb   : > { %v503_v22 = vpop.f32.mrf.mxu0 }
  0xd3   : > { %v505_v23 = vpop.f32.mrf.mxu0 }
  0xd4   : > { %v535_v24 = vpack.c.bf16 %v505_v23, %v503_v22 }
  0xdb   : > { %v508_v25 = vpop.f32.mrf.mxu0 }
  0xe3   : > { %v510_v26 = vpop.f32.mrf.mxu0 }
  0xe4   : > { %v536_v27 = vpack.c.bf16 %v510_v26, %v508_v25 }
  0xeb   : > { %v513_v28 = vpop.f32.mrf.mxu0 }
  0xf3   : > { %v515_v29 = vpop.f32.mrf.mxu0 }
  0xf4   : > { %v537_v39 = vpack.c.bf16 %v515_v29, %v513_v28 }
  0xfb   : > { %v518_v30 = vpop.f32.mrf.mxu0 }
 0x103   : > { %v520_v31 = vpop.f32.mrf.mxu0 }
 0x104   : > { %v538_v38 = vpack.c.bf16 %v520_v31, %v518_v30 }
 0x10b   : > { %v523_v32 = vpop.f32.mrf.mxu0 }
 0x113   : > { %v525_v33 = vpop.f32.mrf.mxu0 }
 0x114   : > { %v539_v37 = vpack.c.bf16 %v525_v33, %v523_v32 }
 0x11b   : > { %v528_v34 = vpop.f32.mrf.mxu0 }
 0x123   : > { %v530_v35 = vpop.f32.mrf.mxu0 }
 0x124   : > { %v540_v36 = vpack.c.bf16 %v530_v35, %v528_v34 }
 0x126   : > { %593 = vmatpush.bf16.msra.mxu1 %v540_v36 }
 0x12a   : > { %594 = vmatpush.bf16.msra.mxu1 %v539_v37 }
 0x12e   : > { %595 = vmatpush.bf16.msra.mxu1 %v538_v38 }
 0x132   : > { %596 = vmatpush.bf16.msra.mxu1 %v537_v39 }
 0x136   : > { %597 = vmatpush.bf16.msra.mxu1 %v536_v27 }
 0x13a   : > { %598 = vmatpush.bf16.msra.mxu1 %v535_v24 }
 0x13e   : > { %599 = vmatpush.bf16.msra.mxu1 %v534_v21 }
 0x142   : > { %600 = vmatpush.bf16.msra.mxu1 %v533_v18 }
 0x145   : > { %601 = vmatmul.bf16.vlgmr.msra.gmra.mxu1 %v1232_v40 }
 0x155   : > { %606 = vmatmul.bf16.gmra.mxu1 %v1236_v41 }
 0x165   : > { %611 = vmatmul.bf16.gmra.mxu1 %v1240_v42 }
 0x175   : > { %616 = vmatmul.bf16.gmra.mxu1 %v1244_v43 }
 0x185   : > { %621 = vmatmul.bf16.gmra.mxu1 %v1248_v44 }
 0x195   : > { %626 = vmatmul.bf16.gmra.mxu1 %v1256_v46 }
 0x1a5   : > { %631 = vmatmul.bf16.gmra.mxu1 %v1260_v51 }
 0x1b5   : > { %636 = vmatmul.bf16.gmra.mxu1 %v1264_v55 }
 0x1c2   : > { %v602_v56 = vpop.f32.mrf.mxu1 }
 0x1c3   : > { %v603_v58 = vadd.f32 %v1155_v57, %v602_v56 }
 0x1c5   : > { %v642_v61 = vmax.f32 %v603_v58, 0.0 }
 0x1ca   : > { %v604_v59 = vpop.f32.mrf.mxu1 }
 0x1cb   : > { %v605_v60 = vadd.f32 %v1155_v57, %v604_v59 }
 0x1cd   : > { %v643_v62 = vmax.f32 %v605_v60, 0.0 }
 0x1cf   : > { %v658_v63 = vpack.c.bf16 %v643_v62, %v642_v61 }
 0x1d1   : > { %738 = vmatmul.bf16.vlgmr.msra.gmra.mxu2 %v658_v63 }
 0x1d2   : > { %v607_v0 = vpop.f32.mrf.mxu1 }
 0x1d3   : > { %v608_v1 = vadd.f32 %v1155_v57, %v607_v0 }
 0x1d5   : > { %v644_v4 = vmax.f32 %v608_v1, 0.0 }
 0x1da   : > { %v609_v2 = vpop.f32.mrf.mxu1 }
 0x1db   : > { %v610_v3 = vadd.f32 %v1155_v57, %v609_v2 }
 0x1dd   : > { %v645_v5 = vmax.f32 %v610_v3, 0.0 }
 0x1df   : > { %v659_v6 = vpack.c.bf16 %v645_v5, %v644_v4 }
 0x1e1   : > { %743 = vmatmul.bf16.gmra.mxu2 %v659_v6 }
 0x1e2   : > { %v612_v7 = vpop.f32.mrf.mxu1 }
 0x1e3   : > { %v613_v8 = vadd.f32 %v1155_v57, %v612_v7 }
 0x1e5   : > { %v646_v11 = vmax.f32 %v613_v8, 0.0 }
 0x1ea   : > { %v614_v9 = vpop.f32.mrf.mxu1 }
 0x1eb   : > { %v615_v10 = vadd.f32 %v1155_v57, %v614_v9 }
 0x1ed   : > { %v647_v12 = vmax.f32 %v615_v10, 0.0 }
 0x1ef   : > { %v660_v13 = vpack.c.bf16 %v647_v12, %v646_v11 }
 0x1f1   : > { %748 = vmatmul.bf16.gmra.mxu2 %v660_v13 }
 0x1f2   : > { %v617_v14 = vpop.f32.mrf.mxu1 }
 0x1f3   : > { %v618_v15 = vadd.f32 %v1155_v57, %v617_v14 }
 0x1f5   : > { %v648_v18 = vmax.f32 %v618_v15, 0.0 }
 0x1fa   : > { %v619_v16 = vpop.f32.mrf.mxu1 }
 0x1fb   : > { %v620_v17 = vadd.f32 %v1155_v57, %v619_v16 }
 0x1fd   : > { %v649_v19 = vmax.f32 %v620_v17, 0.0  ;;  %v1156_v17 = vld [vmem:[%s334_s19] ss:$0 sm:$0xff] }
 0x1ff   : > { %v661_v20 = vpack.c.bf16 %v649_v19, %v648_v18 }
 0x201   : > { %753 = vmatmul.bf16.gmra.mxu2 %v661_v20 }
 0x202   : > { %v622_v21 = vpop.f32.mrf.mxu1 }
 0x203   : > { %v623_v22 = vadd.f32 %v1155_v57, %v622_v21 }
 0x205   : > { %v650_v25 = vmax.f32 %v623_v22, 0.0 }
 0x20a   : > { %v624_v23 = vpop.f32.mrf.mxu1 }
 0x20b   : > { %v625_v24 = vadd.f32 %v1155_v57, %v624_v23 }
 0x20d   : > { %v651_v26 = vmax.f32 %v625_v24, 0.0 }
 0x20f   : > { %v662_v27 = vpack.c.bf16 %v651_v26, %v650_v25 }
 0x211   : > { %758 = vmatmul.bf16.gmra.mxu2 %v662_v27 }
 0x212   : > { %v627_v28 = vpop.f32.mrf.mxu1 }
 0x213   : > { %v628_v29 = vadd.f32 %v1155_v57, %v627_v28 }
 0x215   : > { %v652_v32 = vmax.f32 %v628_v29, 0.0 }
 0x21a   : > { %v629_v30 = vpop.f32.mrf.mxu1 }
 0x21b   : > { %v630_v31 = vadd.f32 %v1155_v57, %v629_v30 }
 0x21d   : > { %v653_v33 = vmax.f32 %v630_v31, 0.0 }
 0x21f   : > { %v663_v34 = vpack.c.bf16 %v653_v33, %v652_v32 }
 0x221   : > { %763 = vmatmul.bf16.gmra.mxu2 %v663_v34 }
 0x222   : > { %v632_v35 = vpop.f32.mrf.mxu1 }
 0x223   : > { %v633_v36 = vadd.f32 %v1155_v57, %v632_v35 }
 0x225   : > { %v654_v39 = vmax.f32 %v633_v36, 0.0 }
 0x22a   : > { %v634_v37 = vpop.f32.mrf.mxu1 }
 0x22b   : > { %v635_v38 = vadd.f32 %v1155_v57, %v634_v37 }
 0x22d   : > { %v655_v45 = vmax.f32 %v635_v38, 0.0 }
 0x22f   : > { %v664_v47 = vpack.c.bf16 %v655_v45, %v654_v39 }
 0x231   : > { %768 = vmatmul.bf16.gmra.mxu2 %v664_v47 }
 0x232   : > { %v637_v48 = vpop.f32.mrf.mxu1 }
 0x233   : > { %v638_v49 = vadd.f32 %v1155_v57, %v637_v48 }
 0x235   : > { %v656_v53 = vmax.f32 %v638_v49, 0.0 }
 0x23a   : > { %v639_v50 = vpop.f32.mrf.mxu1 }
 0x23b   : > { %v640_v52 = vadd.f32 %v1155_v57, %v639_v50 }
 0x23d   : > { %v657_v54 = vmax.f32 %v640_v52, 0.0 }
 0x23f   : > { %v665_v56 = vpack.c.bf16 %v657_v54, %v656_v53 }
 0x241   : > { %773 = vmatmul.bf16.gmra.mxu2 %v665_v56 }
 0x254   : > { %v739_v58 = vpop.f32.mrf.mxu2 }
 0x25c   : > { %v741_v59 = vpop.f32.mrf.mxu2 }
 0x25d   : > { %v779_v60 = vpack.c.bf16 %v741_v59, %v739_v58 }
 0x264   : > { %v744_v61 = vpop.f32.mrf.mxu2 }
 0x26c   : > { %v746_v62 = vpop.f32.mrf.mxu2 }
 0x26d   : > { %v780_v63 = vpack.c.bf16 %v746_v62, %v744_v61 }
 0x274   : > { %v749_v0 = vpop.f32.mrf.mxu2 }
 0x27c   : > { %v751_v1 = vpop.f32.mrf.mxu2 }
 0x27d   : > { %v781_v2 = vpack.c.bf16 %v751_v1, %v749_v0 }
 0x284   : > { %v754_v3 = vpop.f32.mrf.mxu2 }
 0x28c   : > { %v756_v4 = vpop.f32.mrf.mxu2 }
 0x28d   : > { %v782_v5 = vpack.c.bf16 %v756_v4, %v754_v3 }
 0x294   : > { %v759_v6 = vpop.f32.mrf.mxu2 }
 0x29c   : > { %v761_v7 = vpop.f32.mrf.mxu2 }
 0x29d   : > { %v783_v16 = vpack.c.bf16 %v761_v7, %v759_v6 }
 0x2a4   : > { %v764_v57 = vpop.f32.mrf.mxu2 }
 0x2ac   : > { %v766_v8 = vpop.f32.mrf.mxu2 }
 0x2ad   : > { %v784_v15 = vpack.c.bf16 %v766_v8, %v764_v57 }
 0x2b4   : > { %v769_v9 = vpop.f32.mrf.mxu2 }
 0x2bc   : > { %v771_v10 = vpop.f32.mrf.mxu2 }
 0x2bd   : > { %v785_v14 = vpack.c.bf16 %v771_v10, %v769_v9 }
 0x2c4   : > { %v774_v11 = vpop.f32.mrf.mxu2 }
 0x2cc   : > { %v776_v12 = vpop.f32.mrf.mxu2 }
 0x2cd   : > { %v786_v13 = vpack.c.bf16 %v776_v12, %v774_v11 }
 0x2cf   : > { %791 = vmatpush.bf16.msra.mxu3 %v786_v13 }
 0x2d3   : > { %792 = vmatpush.bf16.msra.mxu3 %v785_v14 }
 0x2d7   : > { %793 = vmatpush.bf16.msra.mxu3 %v784_v15 }
 0x2db   : > { %794 = vmatpush.bf16.msra.mxu3 %v783_v16 }
 0x2df   : > { %795 = vmatpush.bf16.msra.mxu3 %v782_v5 }
 0x2e3   : > { %796 = vmatpush.bf16.msra.mxu3 %v781_v2 }
 0x2e7   : > { %797 = vmatpush.bf16.msra.mxu3 %v780_v63 }
 0x2eb   : > { %798 = vmatpush.bf16.msra.mxu3 %v779_v60 }
 0x2ee   : > { %799 = vmatmul.bf16.vlgmr.msra.gmra.mxu3 %v1232_v40 }
 0x2fe   : > { %804 = vmatmul.bf16.gmra.mxu3 %v1236_v41 }
 0x30e   : > { %809 = vmatmul.bf16.gmra.mxu3 %v1240_v42 }
 0x31e   : > { %814 = vmatmul.bf16.gmra.mxu3 %v1244_v43 }
 0x32e   : > { %819 = vmatmul.bf16.gmra.mxu3 %v1248_v44 }
 0x33e   : > { %824 = vmatmul.bf16.gmra.mxu3 %v1256_v46 }
 0x34e   : > { %829 = vmatmul.bf16.gmra.mxu3 %v1260_v51 }
 0x35e   : > { %834 = vmatmul.bf16.gmra.mxu3 %v1264_v55 }
 0x371   : > { %v800_v40 = vpop.f32.mrf.mxu3 }
 0x372   : > { %v801_v41 = vadd.f32 %v1156_v17, %v800_v40 }
 0x374   : > { %840 = vst [vmem:[%s1288_s25] sm:$0xff] %v801_v41 }
 0x379   : > { %v802_v42 = vpop.f32.mrf.mxu3 }
 0x37a   : > { %v803_v43 = vadd.f32 %v1156_v17, %v802_v42 }
 0x37c   : > { %841 = vst [vmem:[%s1288_s25 + $0x8] sm:$0xff] %v803_v43 }
 0x381   : > { %v805_v44 = vpop.f32.mrf.mxu3 }
 0x382   : > { %v806_v46 = vadd.f32 %v1156_v17, %v805_v44 }
 0x384   : > { %842 = vst [vmem:[%s1288_s25 + $0x10] sm:$0xff] %v806_v46 }
 0x389   : > { %v807_v51 = vpop.f32.mrf.mxu3 }
 0x38a   : > { %v808_v55 = vadd.f32 %v1156_v17, %v807_v51 }
 0x38c   : > { %843 = vst [vmem:[%s1288_s25 + $0x18] sm:$0xff] %v808_v55 }
 0x391   : > { %v810_v18 = vpop.f32.mrf.mxu3 }
 0x392   : > { %v811_v19 = vadd.f32 %v1156_v17, %v810_v18 }
 0x394   : > { %844 = vst [vmem:[%s1288_s25 + $0x20] sm:$0xff] %v811_v19 }
 0x399   : > { %v812_v20 = vpop.f32.mrf.mxu3 }
 0x39a   : > { %v813_v21 = vadd.f32 %v1156_v17, %v812_v20 }
 0x39c   : > { %845 = vst [vmem:[%s1288_s25 + $0x28] sm:$0xff] %v813_v21 }
 0x3a1   : > { %v815_v22 = vpop.f32.mrf.mxu3 }
 0x3a2   : > { %v816_v23 = vadd.f32 %v1156_v17, %v815_v22 }
 0x3a4   : > { %846 = vst [vmem:[%s1288_s25 + $0x30] sm:$0xff] %v816_v23 }
 0x3a9   : > { %v817_v24 = vpop.f32.mrf.mxu3 }
 0x3aa   : > { %v818_v25 = vadd.f32 %v1156_v17, %v817_v24 }
 0x3ac   : > { %847 = vst [vmem:[%s1288_s25 + $0x38] sm:$0xff] %v818_v25 }
 0x3b1   : > { %v820_v26 = vpop.f32.mrf.mxu3 }
 0x3b2   : > { %v821_v27 = vadd.f32 %v1156_v17, %v820_v26 }
 0x3b4   : > { %848 = vst [vmem:[%s1288_s25 + $0x40] sm:$0xff] %v821_v27 }
 0x3b9   : > { %v822_v28 = vpop.f32.mrf.mxu3 }
 0x3ba   : > { %v823_v29 = vadd.f32 %v1156_v17, %v822_v28 }
 0x3bc   : > { %849 = vst [vmem:[%s1288_s25 + $0x48] sm:$0xff] %v823_v29 }
 0x3c1   : > { %v825_v30 = vpop.f32.mrf.mxu3 }
 0x3c2   : > { %v826_v31 = vadd.f32 %v1156_v17, %v825_v30 }
 0x3c4   : > { %850 = vst [vmem:[%s1288_s25 + $0x50] sm:$0xff] %v826_v31 }
 0x3c9   : > { %v827_v32 = vpop.f32.mrf.mxu3 }
 0x3ca   : > { %v828_v33 = vadd.f32 %v1156_v17, %v827_v32 }
 0x3cc   : > { %851 = vst [vmem:[%s1288_s25 + $0x58] sm:$0xff] %v828_v33 }
 0x3d1   : > { %v830_v34 = vpop.f32.mrf.mxu3 }
 0x3d2   : > { %v831_v35 = vadd.f32 %v1156_v17, %v830_v34 }
 0x3d4   : > { %852 = vst [vmem:[%s1288_s25 + $0x60] sm:$0xff] %v831_v35 }
 0x3d9   : > { %v832_v36 = vpop.f32.mrf.mxu3 }
 0x3da   : > { %v833_v37 = vadd.f32 %v1156_v17, %v832_v36 }
 0x3dc   : > { %853 = vst [vmem:[%s1288_s25 + $0x68] sm:$0xff] %v833_v37 }
 0x3e1   : > { %v835_v38 = vpop.f32.mrf.mxu3 }
 0x3e2   : > { %v836_v39 = vadd.f32 %v1156_v17, %v835_v38 }
 0x3e4   : > { %854 = vst [vmem:[%s1288_s25 + $0x70] sm:$0xff] %v836_v39 }
 0x3e9   : > { %v837_v45 = vpop.f32.mrf.mxu3 }
 0x3ea   : > { %v838_v47 = vadd.f32 %v1156_v17, %v837_v45 }
 0x3ec   : > { %855 = vst [vmem:[%s1288_s25 + $0x78] sm:$0xff] %v838_v47 }
 0x3ed PF: > { %s16_s21 = sadd.s32 1, %s1163_s21  }
 0x3ee   : > { %p13_p4 = scmp.ge.s32.totalorder %s16_s21, 4  }
 0x3f0   :  { %15 = sbr.rel (!%p13_p4) target bundleno = 1 (0x1), region = 89 }

// kernel: _forward.3
= control target key start
LH: loop header
LB: loop body
LE: loop exit
PB: predicated region body
PF: predicated region fallthrough
CT: control target
= control target key end

     0   :  { %s2356_s3 = inlined_call_operand.vmem [shape: bf16[128,128], index: 3, kind: input, shape index: {}]   ;;  %s2357_s2 = inlined_call_operand.vmem [shape: bf16[128,128], index: 2, kind: input, shape index: {}]   ;;  %s2358_s0 = inlined_call_operand.vmem [shape: f32[256,128], index: 0, kind: input, shape index: {}]   ;;  %s2359_s1 = inlined_call_operand.vmem [shape: bf16[256,128], index: 1, kind: input, shape index: {}]   ;;  %s2360_s4 = inlined_call_operand.vmem [shape: f32[1,128], index: 4, kind: input, shape index: {}]   ;;  %s2361_s5 = inlined_call_operand.vmem [shape: f32[1,128], index: 5, kind: input, shape index: {}]   ;;  %s2362_s7 = inlined_call_operand.vmem [shape: f32[128,128], index: 7, kind: output, shape index: {1}]   ;;  %s2363_s6 = inlined_call_operand.vmem [shape: f32[128,128], index: 6, kind: output, shape index: {0}]  }
   0x1   :  { %v1342_v0 = vld [vmem:[%s2356_s3 + $0x38] sm:$0xff]  ;;  %v1341_v2 = vld [vmem:[%s2356_s3 + $0x30] sm:$0xff]  ;;  %v1340_v4 = vld [vmem:[%s2356_s3 + $0x28] sm:$0xff] }
   0x2   :  { %v1318_v1 = vld [vmem:[%s2357_s2 + $0x38] sm:$0xff]  ;;  %281 = vmatpush.bf16.msra.mxu0 %v1342_v0  ;;  %1343 = vmatpush.bf16.msra.mxu2 %v1342_v0  ;;  %v1317_v3 = vld [vmem:[%s2357_s2 + $0x30] sm:$0xff]  ;;  %v1316_v5 = vld [vmem:[%s2357_s2 + $0x28] sm:$0xff] }
   0x3   :  { %418 = vmatpush.bf16.msra.mxu1 %v1318_v1  ;;  %1351 = vmatpush.bf16.msra.mxu3 %v1318_v1  ;;  %v1339_v6 = vld [vmem:[%s2356_s3 + $0x20] sm:$0xff]  ;;  %v1338_v8 = vld [vmem:[%s2356_s3 + $0x18] sm:$0xff]  ;;  %v1337_v10 = vld [vmem:[%s2356_s3 + $0x10] sm:$0xff] }
   0x4   :  { %v1315_v7 = vld [vmem:[%s2357_s2 + $0x20] sm:$0xff]  ;;  %v1314_v9 = vld [vmem:[%s2357_s2 + $0x18] sm:$0xff]  ;;  %v1313_v11 = vld [vmem:[%s2357_s2 + $0x10] sm:$0xff] }
   0x5   :  { %v1336_v12 = vld [vmem:[%s2356_s3 + $0x8] sm:$0xff]  ;;  %v1335_v14 = vld [vmem:[%s2356_s3] sm:$0xff]  ;;  %v1668_v24 = vld [vmem:[%s2358_s0 + $0x10] sm:$0xff] }
   0x6   :  { %282 = vmatpush.bf16.msra.mxu0 %v1341_v2  ;;  %1344 = vmatpush.bf16.msra.mxu2 %v1341_v2  ;;  %v1312_v13 = vld [vmem:[%s2357_s2 + $0x8] sm:$0xff]  ;;  %v1311_v15 = vld [vmem:[%s2357_s2] sm:$0xff]  ;;  %v28_v25 = vld [vmem:[%s2358_s0 + $0x18] sm:$0xff] }
   0x7   :  { %419 = vmatpush.bf16.msra.mxu1 %v1317_v3  ;;  %1352 = vmatpush.bf16.msra.mxu3 %v1317_v3  ;;  %v1638_v16 = vld [vmem:[%s2358_s0] sm:$0xff]  ;;  %v1643_v17 = vld [vmem:[%s2358_s0 + $0x8] sm:$0xff]  ;;  %v1676_v26 = vld [vmem:[%s2358_s0 + $0x90] sm:$0xff]  ;;  %v58_v30 = vpack.c.bf16 %v28_v25, %v1668_v24 }
   0x8   :  { %v1648_v18 = vld [vmem:[%s2358_s0 + $0x80] sm:$0xff]  ;;  %v1653_v19 = vld [vmem:[%s2358_s0 + $0x88] sm:$0xff]  ;;  %v57_v22 = vpack.c.bf16 %v1643_v17, %v1638_v16  ;;  %v44_v27 = vld [vmem:[%s2358_s0 + $0x98] sm:$0xff] }
   0x9   :  { %v1319_v20 = vld [vmem:[%s2359_s1] sm:$0xff]  ;;  %v65_v23 = vpack.c.bf16 %v1653_v19, %v1648_v18  ;;  %v1320_v28 = vld [vmem:[%s2359_s1 + $0x8] sm:$0xff]  ;;  %v66_v31 = vpack.c.bf16 %v44_v27, %v1676_v26  ;;  %v1321_v36 = vld [vmem:[%s2359_s1 + $0x10] sm:$0xff] }
   0xa   :  { %283 = vmatpush.bf16.msra.mxu0 %v1340_v4  ;;  %1345 = vmatpush.bf16.msra.mxu2 %v1340_v4  ;;  %v1327_v21 = vld [vmem:[%s2359_s1 + $0x40] sm:$0xff]  ;;  %v1328_v29 = vld [vmem:[%s2359_s1 + $0x48] sm:$0xff]  ;;  %v1329_v37 = vld [vmem:[%s2359_s1 + $0x50] sm:$0xff] }
   0xb   :  { %420 = vmatpush.bf16.msra.mxu1 %v1316_v5  ;;  %1353 = vmatpush.bf16.msra.mxu3 %v1316_v5  ;;  %v29_v32 = vld [vmem:[%s2358_s0 + $0x20] sm:$0xff]  ;;  %v30_v33 = vld [vmem:[%s2358_s0 + $0x28] sm:$0xff]  ;;  %v31_v40 = vld [vmem:[%s2358_s0 + $0x30] sm:$0xff] }
   0xc   :  { %v45_v34 = vld [vmem:[%s2358_s0 + $0xa0] sm:$0xff]  ;;  %v46_v35 = vld [vmem:[%s2358_s0 + $0xa8] sm:$0xff]  ;;  %v59_v38 = vpack.c.bf16 %v30_v33, %v29_v32  ;;  %v32_v41 = vld [vmem:[%s2358_s0 + $0x38] sm:$0xff] }
   0xd   :  { %v67_v39 = vpack.c.bf16 %v46_v35, %v45_v34  ;;  %v47_v42 = vld [vmem:[%s2358_s0 + $0xb0] sm:$0xff]  ;;  %v48_v43 = vld [vmem:[%s2358_s0 + $0xb8] sm:$0xff]  ;;  %v60_v46 = vpack.c.bf16 %v32_v41, %v31_v40  ;;  %v33_v48 = vld [vmem:[%s2358_s0 + $0x40] sm:$0xff] }
   0xe   :  { %284 = vmatpush.bf16.msra.mxu0 %v1339_v6  ;;  %1346 = vmatpush.bf16.msra.mxu2 %v1339_v6  ;;  %v1322_v44 = vld [vmem:[%s2359_s1 + $0x18] sm:$0xff]  ;;  %v68_v47 = vpack.c.bf16 %v48_v43, %v47_v42  ;;  %v34_v49 = vld [vmem:[%s2358_s0 + $0x48] sm:$0xff]  ;;  %v49_v50 = vld [vmem:[%s2358_s0 + $0xc0] sm:$0xff] }
   0xf   :  { %421 = vmatpush.bf16.msra.mxu1 %v1315_v7  ;;  %1354 = vmatpush.bf16.msra.mxu3 %v1315_v7  ;;  %v1330_v45 = vld [vmem:[%s2359_s1 + $0x58] sm:$0xff]  ;;  %v50_v51 = vld [vmem:[%s2358_s0 + $0xc8] sm:$0xff]  ;;  %v1323_v52 = vld [vmem:[%s2359_s1 + $0x20] sm:$0xff]  ;;  %v61_v54 = vpack.c.bf16 %v34_v49, %v33_v48 }
  0x10   :  { %v1331_v53 = vld [vmem:[%s2359_s1 + $0x60] sm:$0xff]  ;;  %v69_v55 = vpack.c.bf16 %v50_v51, %v49_v50  ;;  %v35_v56 = vld [vmem:[%s2358_s0 + $0x50] sm:$0xff]  ;;  %v36_v57 = vld [vmem:[%s2358_s0 + $0x58] sm:$0xff] }
  0x11   :  { %v51_v58 = vld [vmem:[%s2358_s0 + $0xd0] sm:$0xff]  ;;  %v52_v59 = vld [vmem:[%s2358_s0 + $0xd8] sm:$0xff]  ;;  %v1324_v60 = vld [vmem:[%s2359_s1 + $0x28] sm:$0xff]  ;;  %v62_v62 = vpack.c.bf16 %v36_v57, %v35_v56 }
  0x12   :  { %285 = vmatpush.bf16.msra.mxu0 %v1338_v8  ;;  %1347 = vmatpush.bf16.msra.mxu2 %v1338_v8  ;;  %v1332_v61 = vld [vmem:[%s2359_s1 + $0x68] sm:$0xff]  ;;  %v70_v63 = vpack.c.bf16 %v52_v59, %v51_v58  ;;  %v37_v0 = vld [vmem:[%s2358_s0 + $0x60] sm:$0xff]  ;;  %v1325_v4 = vld [vmem:[%s2359_s1 + $0x30] sm:$0xff] }
  0x13   :  { %422 = vmatpush.bf16.msra.mxu1 %v1314_v9  ;;  %1355 = vmatpush.bf16.msra.mxu3 %v1314_v9  ;;  %v38_v1 = vld [vmem:[%s2358_s0 + $0x68] sm:$0xff]  ;;  %v53_v2 = vld [vmem:[%s2358_s0 + $0xe0] sm:$0xff]  ;;  %v1333_v5 = vld [vmem:[%s2359_s1 + $0x70] sm:$0xff] }
  0x14   :  { %v54_v3 = vld [vmem:[%s2358_s0 + $0xe8] sm:$0xff]  ;;  %v63_v6 = vpack.c.bf16 %v38_v1, %v37_v0  ;;  %v39_v8 = vld [vmem:[%s2358_s0 + $0x70] sm:$0xff]  ;;  %v40_v9 = vld [vmem:[%s2358_s0 + $0x78] sm:$0xff] }
  0x15   :  { %v71_v7 = vpack.c.bf16 %v54_v3, %v53_v2  ;;  %v1806_v32 = vld [vmem:[%s2361_s5] ss:$0 sm:$0xff] }
  0x16   :  { %286 = vmatpush.bf16.msra.mxu0 %v1337_v10  ;;  %1348 = vmatpush.bf16.msra.mxu2 %v1337_v10  ;;  %v55_v10 = vld [vmem:[%s2358_s0 + $0xf0] sm:$0xff] }
  0x17   :  { %423 = vmatpush.bf16.msra.mxu1 %v1313_v11  ;;  %1356 = vmatpush.bf16.msra.mxu3 %v1313_v11  ;;  %v56_v11 = vld [vmem:[%s2358_s0 + $0xf8] sm:$0xff] }
  0x1a   :  { %287 = vmatpush.bf16.msra.mxu0 %v1336_v12  ;;  %1349 = vmatpush.bf16.msra.mxu2 %v1336_v12  ;;  %v1326_v12 = vld [vmem:[%s2359_s1 + $0x38] sm:$0xff] }
  0x1b   :  { %424 = vmatpush.bf16.msra.mxu1 %v1312_v13  ;;  %1357 = vmatpush.bf16.msra.mxu3 %v1312_v13  ;;  %v1334_v13 = vld [vmem:[%s2359_s1 + $0x78] sm:$0xff] }
  0x1e   :  { %288 = vmatpush.bf16.msra.mxu0 %v1335_v14  ;;  %1350 = vmatpush.bf16.msra.mxu2 %v1335_v14  ;;  %v64_v14 = vpack.c.bf16 %v40_v9, %v39_v8 }
  0x1f   :  { %425 = vmatpush.bf16.msra.mxu1 %v1311_v15  ;;  %1358 = vmatpush.bf16.msra.mxu3 %v1311_v15  ;;  %v72_v15 = vpack.c.bf16 %v56_v11, %v55_v10 }
  0x21   :  { %289 = vmatmul.bf16.vlgmr.msra.gmra.mxu0 %v1319_v20  ;;  %329 = vmatmul.bf16.vlgmr.msra.gmra.mxu2 %v1327_v21  ;;  %v1800_v21 = vld [vmem:[%s2360_s4] ss:$0 sm:$0xff] }
  0x22   :  { %426 = vmatmul.bf16.vlgmr.msra.gmra.mxu1 %v57_v22  ;;  %466 = vmatmul.bf16.vlgmr.msra.gmra.mxu3 %v65_v23 }
  0x31   :  { %294 = vmatmul.bf16.gmra.mxu0 %v1320_v28  ;;  %334 = vmatmul.bf16.gmra.mxu2 %v1328_v29 }
  0x32   :  { %431 = vmatmul.bf16.gmra.mxu1 %v58_v30  ;;  %471 = vmatmul.bf16.gmra.mxu3 %v66_v31 }
  0x41   :  { %299 = vmatmul.bf16.gmra.mxu0 %v1321_v36  ;;  %339 = vmatmul.bf16.gmra.mxu2 %v1329_v37 }
  0x42   :  { %436 = vmatmul.bf16.gmra.mxu1 %v59_v38  ;;  %476 = vmatmul.bf16.gmra.mxu3 %v67_v39 }
  0x51   :  { %304 = vmatmul.bf16.gmra.mxu0 %v1322_v44  ;;  %344 = vmatmul.bf16.gmra.mxu2 %v1330_v45 }
  0x52   :  { %441 = vmatmul.bf16.gmra.mxu1 %v60_v46  ;;  %481 = vmatmul.bf16.gmra.mxu3 %v68_v47 }
  0x61   :  { %309 = vmatmul.bf16.gmra.mxu0 %v1323_v52  ;;  %349 = vmatmul.bf16.gmra.mxu2 %v1331_v53 }
  0x62   :  { %446 = vmatmul.bf16.gmra.mxu1 %v61_v54  ;;  %486 = vmatmul.bf16.gmra.mxu3 %v69_v55 }
  0x71   :  { %314 = vmatmul.bf16.gmra.mxu0 %v1324_v60  ;;  %354 = vmatmul.bf16.gmra.mxu2 %v1332_v61 }
  0x72   :  { %451 = vmatmul.bf16.gmra.mxu1 %v62_v62  ;;  %491 = vmatmul.bf16.gmra.mxu3 %v70_v63 }
  0x81   :  { %319 = vmatmul.bf16.gmra.mxu0 %v1325_v4  ;;  %359 = vmatmul.bf16.gmra.mxu2 %v1333_v5 }
  0x82   :  { %456 = vmatmul.bf16.gmra.mxu1 %v63_v6  ;;  %496 = vmatmul.bf16.gmra.mxu3 %v71_v7 }
  0x91   :  { %324 = vmatmul.bf16.gmra.mxu0 %v1326_v12  ;;  %364 = vmatmul.bf16.gmra.mxu2 %v1334_v13 }
  0x92   :  { %461 = vmatmul.bf16.gmra.mxu1 %v64_v14  ;;  %501 = vmatmul.bf16.gmra.mxu3 %v72_v15 }
  0x9e   :  { %v290_v20 = vpop.f32.mrf.mxu0 }
  0x9f   :  { %v427_v22 = vpop.f32.mrf.mxu1 }
  0xa0   :  { %v428_v23 = vadd.f32 %v427_v22, %v290_v20 }
  0xa2   :  { %v511_v25 = vadd.f32 %v1800_v21, %v428_v23 }
  0xa4   :  { %1361 = vtanh.f32 %v511_v25  ;;  %v330_v27 = vpop.f32.mrf.mxu2 }
  0xa5   :  { %v467_v28 = vpop.f32.mrf.mxu3 }
  0xa6   :  { %v468_v29 = vadd.f32 %v467_v28, %v330_v27  ;;  %v292_v30 = vpop.f32.mrf.mxu0 }
  0xa7   :  { %v429_v31 = vpop.f32.mrf.mxu1 }
  0xa8   :  { %v527_v33 = vadd.f32 %v1800_v21, %v468_v29  ;;  %v430_v34 = vadd.f32 %v429_v31, %v292_v30 }
  0xaa   :  { %v1362_v35 = vpop.eup %1361  ;;  %1363 = vtanh.f32 %v527_v33  ;;  %v512_v36 = vadd.f32 %v1800_v21, %v430_v34 }
  0xab   :  { %v579_v37 = vmul.f32 %v1362_v35, %v1806_v32 }
  0xac   :  { %1365 = vtanh.f32 %v512_v36  ;;  %v332_v38 = vpop.f32.mrf.mxu2 }
  0xad   :  { %v469_v39 = vpop.f32.mrf.mxu3  ;;  %611 = vadd.xlane.f32.xlu0 %v579_v37 }
  0xae   :  { %v470_v40 = vadd.f32 %v469_v39, %v332_v38  ;;  %v295_v41 = vpop.f32.mrf.mxu0 }
  0xaf   :  { %v432_v42 = vpop.f32.mrf.mxu1 }
  0xb0   :  { %v1364_v43 = vpop.eup %1363  ;;  %v528_v44 = vadd.f32 %v1800_v21, %v470_v40  ;;  %v433_v45 = vadd.f32 %v432_v42, %v295_v41 }
  0xb1   :  { %v595_v46 = vmul.f32 %v1364_v43, %v1806_v32 }
  0xb2   :  { %v1366_v47 = vpop.eup %1365  ;;  %1367 = vtanh.f32 %v528_v44  ;;  %v513_v48 = vadd.f32 %v1800_v21, %v433_v45 }
  0xb3   :  { %643 = vadd.xlane.f32.xlu1 %v595_v46  ;;  %v580_v49 = vmul.f32 %v1366_v47, %v1806_v32 }
  0xb4   :  { %1369 = vtanh.f32 %v513_v48  ;;  %v335_v50 = vpop.f32.mrf.mxu2 }
  0xb5   :  { %v472_v51 = vpop.f32.mrf.mxu3  ;;  %613 = vadd.xlane.f32.xlu0 %v580_v49 }
  0xb6   :  { %v473_v52 = vadd.f32 %v472_v51, %v335_v50  ;;  %v297_v53 = vpop.f32.mrf.mxu0 }
  0xb7   :  { %v434_v54 = vpop.f32.mrf.mxu1 }
  0xb8   :  { %v1368_v55 = vpop.eup %1367  ;;  %v529_v56 = vadd.f32 %v1800_v21, %v473_v52  ;;  %v435_v57 = vadd.f32 %v434_v54, %v297_v53 }
  0xb9   :  { %v596_v58 = vmul.f32 %v1368_v55, %v1806_v32 }
  0xba   :  { %v1370_v59 = vpop.eup %1369  ;;  %1371 = vtanh.f32 %v529_v56  ;;  %v514_v60 = vadd.f32 %v1800_v21, %v435_v57 }
  0xbb   :  { %645 = vadd.xlane.f32.xlu2 %v596_v58  ;;  %v581_v61 = vmul.f32 %v1370_v59, %v1806_v32 }
  0xbc   :  { %1373 = vtanh.f32 %v514_v60  ;;  %v337_v62 = vpop.f32.mrf.mxu2 }
  0xbd   :  { %v474_v63 = vpop.f32.mrf.mxu3  ;;  %615 = vadd.xlane.f32.xlu1 %v581_v61 }
  0xbe   :  { %v475_v0 = vadd.f32 %v474_v63, %v337_v62  ;;  %v300_v1 = vpop.f32.mrf.mxu0 }
  0xbf   :  { %v437_v2 = vpop.f32.mrf.mxu1 }
  0xc0   :  { %v1372_v3 = vpop.eup %1371  ;;  %v530_v4 = vadd.f32 %v1800_v21, %v475_v0  ;;  %v438_v5 = vadd.f32 %v437_v2, %v300_v1 }
  0xc1   :  { %v597_v6 = vmul.f32 %v1372_v3, %v1806_v32 }
  0xc2   :  { %v1374_v7 = vpop.eup %1373  ;;  %1375 = vtanh.f32 %v530_v4  ;;  %v515_v8 = vadd.f32 %v1800_v21, %v438_v5 }
  0xc3   :  { %647 = vadd.xlane.f32.xlu0 %v597_v6  ;;  %v582_v9 = vmul.f32 %v1374_v7, %v1806_v32 }
  0xc4   :  { %1377 = vtanh.f32 %v515_v8  ;;  %v340_v10 = vpop.f32.mrf.mxu2 }
  0xc5   :  { %v477_v11 = vpop.f32.mrf.mxu3  ;;  %617 = vadd.xlane.f32.xlu1 %v582_v9 }
  0xc6   :  { %v478_v12 = vadd.f32 %v477_v11, %v340_v10  ;;  %v302_v13 = vpop.f32.mrf.mxu0 }
  0xc7   :  { %v439_v14 = vpop.f32.mrf.mxu1 }
  0xc8   :  { %v1376_v15 = vpop.eup %1375  ;;  %v531_v20 = vadd.f32 %v1800_v21, %v478_v12  ;;  %v440_v22 = vadd.f32 %v439_v14, %v302_v13 }
  0xc9   :  { %v598_v27 = vmul.f32 %v1376_v15, %v1806_v32 }
  0xca   :  { %v1378_v23 = vpop.eup %1377  ;;  %1379 = vtanh.f32 %v531_v20  ;;  %v516_v29 = vadd.f32 %v1800_v21, %v440_v22 }
  0xcb   :  { %v583_v25 = vmul.f32 %v1378_v23, %v1806_v32 }
  0xcc   :  { %v342_v28 = vpop.f32.mrf.mxu2  ;;  %1381 = vtanh.f32 %v516_v29 }
  0xcd   :  { %v479_v30 = vpop.f32.mrf.mxu3  ;;  %619 = vadd.xlane.f32.xlu2 %v583_v25  ;;  %649 = vadd.xlane.f32.xlu1 %v598_v27 }
  0xce   :  { %v480_v31 = vadd.f32 %v479_v30, %v342_v28  ;;  %v305_v33 = vpop.f32.mrf.mxu0 }
  0xcf   :  { %v442_v34 = vpop.f32.mrf.mxu1 }
  0xd0   :  { %v1380_v35 = vpop.eup %1379  ;;  %v532_v36 = vadd.f32 %v1800_v21, %v480_v31  ;;  %v443_v37 = vadd.f32 %v442_v34, %v305_v33 }
  0xd1   :  { %v599_v38 = vmul.f32 %v1380_v35, %v1806_v32 }
  0xd2   :  { %1383 = vtanh.f32 %v532_v36  ;;  %v517_v39 = vadd.f32 %v1800_v21, %v443_v37  ;;  %v1382_v44 = vpop.eup %1381 }
  0xd3   :  { %v584_v50 = vmul.f32 %v1382_v44, %v1806_v32 }
  0xd4   :  { %v345_v40 = vpop.f32.mrf.mxu2  ;;  %1385 = vtanh.f32 %v517_v39 }
  0xd5   :  { %v482_v41 = vpop.f32.mrf.mxu3  ;;  %651 = vadd.xlane.f32.xlu2 %v599_v38 }
  0xd6   :  { %v483_v42 = vadd.f32 %v482_v41, %v345_v40  ;;  %v307_v43 = vpop.f32.mrf.mxu0 }
  0xd7   :  { %v444_v45 = vpop.f32.mrf.mxu1 }
  0xd8   :  { %v1384_v46 = vpop.eup %1383  ;;  %v533_v47 = vadd.f32 %v1800_v21, %v483_v42  ;;  %v445_v48 = vadd.f32 %v444_v45, %v307_v43 }
  0xd9   :  { %v600_v49 = vmul.f32 %v1384_v46, %v1806_v32 }
  0xda   :  { %1387 = vtanh.f32 %v533_v47  ;;  %v518_v51 = vadd.f32 %v1800_v21, %v445_v48  ;;  %v1386_v54 = vpop.eup %1385 }
  0xdb   :  { %653 = vadd.xlane.f32.xlu0 %v600_v49  ;;  %v585_v62 = vmul.f32 %v1386_v54, %v1806_v32 }
  0xdc   :  { %v347_v52 = vpop.f32.mrf.mxu2  ;;  %1389 = vtanh.f32 %v518_v51 }
  0xdd   :  { %v484_v53 = vpop.f32.mrf.mxu3  ;;  %621 = vadd.xlane.f32.xlu2 %v584_v50 }
  0xde   :  { %v485_v55 = vadd.f32 %v484_v53, %v347_v52  ;;  %v310_v56 = vpop.f32.mrf.mxu0 }
  0xdf   :  { %v447_v57 = vpop.f32.mrf.mxu1 }
  0xe0   :  { %v1388_v58 = vpop.eup %1387  ;;  %v534_v59 = vadd.f32 %v1800_v21, %v485_v55  ;;  %v448_v60 = vadd.f32 %v447_v57, %v310_v56 }
  0xe1   :  { %v601_v61 = vmul.f32 %v1388_v58, %v1806_v32 }
  0xe2   :  { %1391 = vtanh.f32 %v534_v59  ;;  %v519_v63 = vadd.f32 %v1800_v21, %v448_v60  ;;  %v1390_v2 = vpop.eup %1389 }
  0xe3   :  { %655 = vadd.xlane.f32.xlu1 %v601_v61  ;;  %623 = vadd.xlane.f32.xlu0 %v585_v62  ;;  %v586_v10 = vmul.f32 %v1390_v2, %v1806_v32 }
  0xe4   :  { %v350_v0 = vpop.f32.mrf.mxu2  ;;  %1393 = vtanh.f32 %v519_v63 }
  0xe5   :  { %v487_v1 = vpop.f32.mrf.mxu3 }
  0xe6   :  { %v488_v3 = vadd.f32 %v487_v1, %v350_v0  ;;  %v312_v4 = vpop.f32.mrf.mxu0 }
  0xe7   :  { %v449_v5 = vpop.f32.mrf.mxu1 }
  0xe8   :  { %v1392_v6 = vpop.eup %1391  ;;  %v535_v7 = vadd.f32 %v1800_v21, %v488_v3  ;;  %v450_v8 = vadd.f32 %v449_v5, %v312_v4 }
  0xe9   :  { %v602_v9 = vmul.f32 %v1392_v6, %v1806_v32 }
  0xea   :  { %1395 = vtanh.f32 %v535_v7  ;;  %v520_v11 = vadd.f32 %v1800_v21, %v450_v8  ;;  %v1394_v14 = vpop.eup %1393 }
  0xeb   :  { %657 = vadd.xlane.f32.xlu2 %v602_v9  ;;  %625 = vadd.xlane.f32.xlu1 %v586_v10  ;;  %v587_v28 = vmul.f32 %v1394_v14, %v1806_v32 }
  0xec   :  { %v352_v12 = vpop.f32.mrf.mxu2  ;;  %1397 = vtanh.f32 %v520_v11 }
  0xed   :  { %v489_v13 = vpop.f32.mrf.mxu3 }
  0xee   :  { %v490_v15 = vadd.f32 %v489_v13, %v352_v12  ;;  %v315_v20 = vpop.f32.mrf.mxu0 }
  0xef   :  { %v452_v22 = vpop.f32.mrf.mxu1 }
  0xf0   :  { %v1396_v23 = vpop.eup %1395  ;;  %v536_v25 = vadd.f32 %v1800_v21, %v490_v15  ;;  %v453_v27 = vadd.f32 %v452_v22, %v315_v20 }
  0xf1   :  { %v603_v29 = vmul.f32 %v1396_v23, %v1806_v32 }
  0xf2   :  { %1399 = vtanh.f32 %v536_v25  ;;  %v521_v30 = vadd.f32 %v1800_v21, %v453_v27  ;;  %v1398_v34 = vpop.eup %1397 }
  0xf3   :  { %627 = vadd.xlane.f32.xlu2 %v587_v28  ;;  %659 = vadd.xlane.f32.xlu0 %v603_v29  ;;  %v588_v42 = vmul.f32 %v1398_v34, %v1806_v32 }
  0xf4   :  { %v355_v31 = vpop.f32.mrf.mxu2  ;;  %1401 = vtanh.f32 %v521_v30 }
  0xf5   :  { %v492_v33 = vpop.f32.mrf.mxu3 }
  0xf6   :  { %v493_v35 = vadd.f32 %v492_v33, %v355_v31  ;;  %v317_v36 = vpop.f32.mrf.mxu0 }
  0xf7   :  { %v454_v37 = vpop.f32.mrf.mxu1 }
  0xf8   :  { %v1400_v38 = vpop.eup %1399  ;;  %v537_v39 = vadd.f32 %v1800_v21, %v493_v35  ;;  %v455_v40 = vadd.f32 %v454_v37, %v317_v36 }
  0xf9   :  { %v604_v41 = vmul.f32 %v1400_v38, %v1806_v32 }
  0xfa   :  { %1403 = vtanh.f32 %v537_v39  ;;  %v522_v43 = vadd.f32 %v1800_v21, %v455_v40  ;;  %v1402_v46 = vpop.eup %1401 }
  0xfb   :  { %661 = vadd.xlane.f32.xlu1 %v604_v41  ;;  %629 = vadd.xlane.f32.xlu0 %v588_v42  ;;  %v589_v54 = vmul.f32 %v1402_v46, %v1806_v32 }
  0xfc   :  { %v357_v44 = vpop.f32.mrf.mxu2  ;;  %1405 = vtanh.f32 %v522_v43 }
  0xfd   :  { %v494_v45 = vpop.f32.mrf.mxu3 }
  0xfe   :  { %v495_v47 = vadd.f32 %v494_v45, %v357_v44  ;;  %v320_v48 = vpop.f32.mrf.mxu0 }
  0xff   :  { %v457_v49 = vpop.f32.mrf.mxu1 }
 0x100   :  { %v1404_v50 = vpop.eup %1403  ;;  %v538_v51 = vadd.f32 %v1800_v21, %v495_v47  ;;  %v458_v52 = vadd.f32 %v457_v49, %v320_v48 }
 0x101   :  { %v605_v53 = vmul.f32 %v1404_v50, %v1806_v32 }
 0x102   :  { %1407 = vtanh.f32 %v538_v51  ;;  %v523_v55 = vadd.f32 %v1800_v21, %v458_v52  ;;  %v1406_v58 = vpop.eup %1405 }
 0x103   :  { %663 = vadd.xlane.f32.xlu2 %v605_v53  ;;  %631 = vadd.xlane.f32.xlu1 %v589_v54  ;;  %v590_v1 = vmul.f32 %v1406_v58, %v1806_v32 }
 0x104   :  { %v360_v56 = vpop.f32.mrf.mxu2  ;;  %1409 = vtanh.f32 %v523_v55 }
 0x105   :  { %v497_v57 = vpop.f32.mrf.mxu3 }
 0x106   :  { %v498_v59 = vadd.f32 %v497_v57, %v360_v56  ;;  %v322_v60 = vpop.f32.mrf.mxu0 }
 0x107   :  { %v459_v61 = vpop.f32.mrf.mxu1 }
 0x108   :  { %v1408_v62 = vpop.eup %1407  ;;  %v539_v63 = vadd.f32 %v1800_v21, %v498_v59  ;;  %v460_v0 = vadd.f32 %v459_v61, %v322_v60 }
 0x109   :  { %v606_v2 = vmul.f32 %v1408_v62, %v1806_v32 }
 0x10a   :  { %1411 = vtanh.f32 %v539_v63  ;;  %v524_v3 = vadd.f32 %v1800_v21, %v460_v0  ;;  %v1410_v6 = vpop.eup %1409 }
 0x10b   :  { %633 = vadd.xlane.f32.xlu2 %v590_v1  ;;  %665 = vadd.xlane.f32.xlu0 %v606_v2  ;;  %v591_v12 = vmul.f32 %v1410_v6, %v1806_v32 }
 0x10c   :  { %v362_v4 = vpop.f32.mrf.mxu2  ;;  %1413 = vtanh.f32 %v524_v3 }
 0x10d   :  { %v499_v5 = vpop.f32.mrf.mxu3 }
 0x10e   :  { %v325_v7 = vpop.f32.mrf.mxu0  ;;  %v500_v13 = vadd.f32 %v499_v5, %v362_v4 }
 0x10f   :  { %v462_v8 = vpop.f32.mrf.mxu1 }
 0x110   :  { %v1412_v9 = vpop.eup %1411  ;;  %v463_v10 = vadd.f32 %v462_v8, %v325_v7  ;;  %v540_v23 = vadd.f32 %v1800_v21, %v500_v13 }
 0x111   :  { %v607_v11 = vmul.f32 %v1412_v9, %v1806_v32 }
 0x112   :  { %v525_v14 = vadd.f32 %v1800_v21, %v463_v10  ;;  %v1414_v22 = vpop.eup %1413 }
 0x113   :  { %667 = vadd.xlane.f32.xlu1 %v607_v11  ;;  %635 = vadd.xlane.f32.xlu0 %v591_v12  ;;  %v592_v30 = vmul.f32 %v1414_v22, %v1806_v32  ;;  %v1123_v11 = vlaneseq }
 0x114   :  { %1415 = vtanh.f32 %v525_v14  ;;  %v365_v15 = vpop.f32.mrf.mxu2 }
 0x115   :  { %v502_v20 = vpop.f32.mrf.mxu3  ;;  %1417 = vtanh.f32 %v540_v23  ;;  %v1880_v23 = vand.u32 127, %v1123_v11 }
 0x116   :  { %v327_v25 = vpop.f32.mrf.mxu0  ;;  %v503_v29 = vadd.f32 %v502_v20, %v365_v15 }
 0x117   :  { %v464_v27 = vpop.f32.mrf.mxu1  ;;  %vm1125_vm3 = vcmp.eq.s32.totalorder %v1880_v23, 0  ;;  %vm1126_vm5 = vcmp.eq.s32.totalorder %v1880_v23, 1 }
 0x118   :  { %v465_v28 = vadd.f32 %v464_v27, %v327_v25  ;;  %v541_v36 = vadd.f32 %v1800_v21, %v503_v29 }
 0x11a   :  { %v1416_v31 = vpop.eup %1415  ;;  %v526_v33 = vadd.f32 %v1800_v21, %v465_v28 }
 0x11b   :  { %637 = vadd.xlane.f32.xlu1 %v592_v30  ;;  %v593_v34 = vmul.f32 %v1416_v31, %v1806_v32  ;;  %v1418_v39 = vpop.eup %1417 }
 0x11c   :  { %1419 = vtanh.f32 %v526_v33  ;;  %v367_v35 = vpop.f32.mrf.mxu2  ;;  %v608_v42 = vmul.f32 %v1418_v39, %v1806_v32 }
 0x11d   :  { %v504_v37 = vpop.f32.mrf.mxu3  ;;  %639 = vadd.xlane.f32.xlu2 %v593_v34  ;;  %1421 = vtanh.f32 %v541_v36 }
 0x11e   :  { %v505_v38 = vadd.f32 %v504_v37, %v367_v35 }
 0x120   :  { %v542_v40 = vadd.f32 %v1800_v21, %v505_v38  ;;  %v612_v44 = vpop.xlane.xlu0 %611 }
 0x122   :  { %v1420_v41 = vpop.eup %1419  ;;  %1423 = vtanh.f32 %v542_v40 }
 0x123   :  { %v594_v43 = vmul.f32 %v1420_v41, %v1806_v32  ;;  %v1422_v46 = vpop.eup %1421 }
 0x124   :  { %v609_v53 = vmul.f32 %v1422_v46, %v1806_v32 }
 0x125   :  { %669 = vadd.xlane.f32.xlu2 %v608_v42  ;;  %641 = vadd.xlane.f32.xlu0 %v594_v43 }
 0x126   :  { %v644_v45 = vpop.xlane.xlu1 %643 }
 0x127   :  { %v675_v47 = vmax.f32 %v612_v44, %v644_v45 }
 0x128   :  { %v1424_v48 = vpop.eup %1423  ;;  %v614_v54 = vpop.xlane.xlu0 %613 }
 0x129   :  { %v691_v49 = vsub.f32 %v612_v44, %v675_v47  ;;  %v739_v50 = vsub.f32 %v644_v45, %v675_v47  ;;  %v610_v51 = vmul.f32 %v1424_v48, %v1806_v32 }
 0x12b   :  { %v707_v52 = vmul.f32 1.442695, %v691_v49  ;;  %v755_v21 = vmul.f32 1.442695, %v739_v50  ;;  %673 = vadd.xlane.f32.xlu1 %v610_v51 }
 0x12d   :  { %1425 = vpow2.f32 %v707_v52  ;;  %671 = vadd.xlane.f32.xlu0 %v609_v53 }
 0x12e   :  { %1427 = vpow2.f32 %v755_v21  ;;  %v646_v55 = vpop.xlane.xlu2 %645 }
 0x12f   :  { %v676_v56 = vmax.f32 %v614_v54, %v646_v55 }
 0x130   :  { %v616_v57 = vpop.xlane.xlu1 %615 }
 0x131   :  { %v692_v58 = vsub.f32 %v614_v54, %v676_v56  ;;  %v740_v59 = vsub.f32 %v646_v55, %v676_v56 }
 0x133   :  { %v1426_v60 = vpop.eup %1425  ;;  %v709_v61 = vmul.f32 1.442695, %v692_v58  ;;  %v757_v62 = vmul.f32 1.442695, %v740_v59 }
 0x134   :  { %v1428_v63 = vpop.eup %1427 }
 0x135   :  { %v787_v0 = vadd.f32 %v1428_v63, %v1426_v60  ;;  %1429 = vpow2.f32 %v709_v61 }
 0x136   :  { %1431 = vpow2.f32 %v757_v62  ;;  %v648_v1 = vpop.xlane.xlu0 %647 }
 0x137   :  { %1433 = vrcp.f32 %v787_v0  ;;  %v677_v2 = vmax.f32 %v616_v57, %v648_v1  ;;  %v814_v20 = vand.u32 2147483648, %v787_v0  ;;  %v812_v27 = vand.u32 2147483647, %v787_v0 }
 0x138   :  { %v618_v32 = vpop.xlane.xlu1 %617  ;;  %vm808_vm1 = vweird.f32 %v787_v0 }
 0x139   :  { %v693_v3 = vsub.f32 %v616_v57, %v677_v2  ;;  %v741_v4 = vsub.f32 %v648_v1, %v677_v2  ;;  %v815_v34 = vor.u32 1.1754944e-38, %v814_v20  ;;  %vm813_vm4 = vcmp.eq.f32.partialorder %v812_v27, 8.507059e+37 }
 0x13b   :  { %v1871_v5 = vpop.eup %1429  ;;  %v711_v7 = vmul.f32 1.442695, %v693_v3  ;;  %v759_v8 = vmul.f32 1.442695, %v741_v4 }
 0x13c   :  { %v1873_v6 = vpop.eup %1431 }
 0x13d   :  { %v1434_v9 = vpop.eup %1433  ;;  %v1877_v10 = vadd.f32 %v1873_v6, %v1871_v5  ;;  %1435 = vpow2.f32 %v711_v7 }
 0x13e   :  { %v804_v12 = vmul.f32 %v1434_v9, %v787_v0  ;;  %vm809_vm0 = vweird.f32 %v1434_v9 }
 0x13f   :  { %1437 = vrcp.f32 %v1877_v10  ;;  %vm810_vm2 = vmor %vm808_vm1, %vm809_vm0  ;;  %v826_v46 = vand.u32 2147483647, %v1877_v10  ;;  %v828_v47 = vand.u32 2147483648, %v1877_v10  ;;  %vm822_vm7 = vweird.f32 %v1877_v10 }
 0x140   :  { %v805_v13 = vsub.f32 1.0, %v804_v12  ;;  %1439 = vpow2.f32 %v759_v8  ;;  %v620_v14 = vpop.xlane.xlu2 %619  ;;  %v650_v15 = vpop.xlane.xlu1 %649 }
 0x141   :  { %v678_v22 = vmax.f32 %v618_v32, %v650_v15  ;;  %vm827_vm9 = vcmp.eq.f32.partialorder %v826_v46, 8.507059e+37 }
 0x142   :  { %v806_v25 = vmul.f32 %v1434_v9, %v805_v13 }
 0x143   :  { %v694_v28 = vsub.f32 %v618_v32, %v678_v22  ;;  %v742_v29 = vsub.f32 %v650_v15, %v678_v22  ;;  %v1882_v30 = vpop.eup %1435 }
 0x144   :  { %v807_v31 = vadd.f32 %v1434_v9, %v806_v25 }
 0x145   :  { %v1438_v33 = vpop.eup %1437  ;;  %v713_v35 = vmul.f32 1.442695, %v694_v28  ;;  %v761_v36 = vmul.f32 1.442695, %v742_v29 }
 0x146   :  { %v1884_v37 = vpop.eup %1439  ;;  %v811_v38 = vsel %vm810_vm2, %v1434_v9, %v807_v31  ;;  %v818_v39 = vmul.f32 %v1438_v33, %v1877_v10  ;;  %vm823_vm6 = vweird.f32 %v1438_v33 }
 0x147   :  { %v816_v40 = vsel %vm813_vm4, %v815_v34, %v811_v38  ;;  %v1891_v41 = vadd.f32 %v1884_v37, %v1882_v30  ;;  %1441 = vpow2.f32 %v713_v35  ;;  %vm824_vm8 = vmor %vm822_vm7, %vm823_vm6 }
 0x148   :  { %v1027_v42 = vmul.f32 %v1426_v60, %v816_v40  ;;  %v1043_v43 = vmul.f32 %v1428_v63, %v816_v40  ;;  %v819_v44 = vsub.f32 1.0, %v818_v39  ;;  %1443 = vpow2.f32 %v761_v36  ;;  %v652_v45 = vpop.xlane.xlu2 %651 }
 0x149   :  { %1445 = vrcp.f32 %v1891_v41  ;;  %v679_v21 = vmax.f32 %v620_v14, %v652_v45  ;;  %v840_v3 = vand.u32 2147483647, %v1891_v41  ;;  %vm836_vm11 = vweird.f32 %v1891_v41 }
 0x14a   :  { %v1059_v48 = vmul.f32 %v1027_v42, %v1638_v16  ;;  %v1075_v49 = vmul.f32 %v1043_v43, %v1648_v18  ;;  %v1127_v50 = vsel %vm1126_vm5, %v1043_v43, 0.0  ;;  %v820_v51 = vmul.f32 %v1438_v33, %v819_v44 }
 0x14b   :  { %v1143_v52 = vsel %vm1125_vm3, %v1027_v42, %v1127_v50  ;;  %v829_v16 = vor.u32 1.1754944e-38, %v828_v47  ;;  %v695_v18 = vsub.f32 %v620_v14, %v679_v21  ;;  %v743_v56 = vsub.f32 %v652_v45, %v679_v21 }
 0x14c   :  { %v1091_v53 = vadd.f32 %v1075_v49, %v1059_v48  ;;  %1159 = vst [vmem:[%s2362_s7] sm:$0xff] %v1143_v52  ;;  %v821_v54 = vadd.f32 %v1438_v33, %v820_v51  ;;  %vm1937_vm12 = vcmp.eq.f32.partialorder %v840_v3, 8.507059e+37  ;;  %v1521_v3 = vld [vmem:[%s2358_s0 + $0x18] sm:$0xff] }
 0x14d   :  { %v1906_v55 = vpop.eup %1441  ;;  %v715_v63 = vmul.f32 1.442695, %v695_v18  ;;  %v763_v32 = vmul.f32 1.442695, %v743_v56 }
 0x14e   :  { %v1909_v57 = vpop.eup %1443  ;;  %1107 = vst [vmem:[%s2363_s6] sm:$0xff] %v1091_v53  ;;  %v825_v58 = vsel %vm824_vm8, %v1438_v33, %v821_v54  ;;  %v654_v59 = vpop.xlane.xlu0 %653 }
 0x14f   :  { %v1446_v60 = vpop.eup %1445  ;;  %v830_v61 = vsel %vm827_vm9, %v829_v16, %v825_v58  ;;  %v1916_v62 = vadd.f32 %v1909_v57, %v1906_v55 }
 0x150   :  { %v1028_v0 = vmul.f32 %v1871_v5, %v830_v61  ;;  %v1044_v1 = vmul.f32 %v1873_v6, %v830_v61  ;;  %v832_v2 = vmul.f32 %v1446_v60, %v1891_v41  ;;  %v622_v4 = vpop.xlane.xlu2 %621  ;;  %vm837_vm10 = vweird.f32 %v1446_v60 }
 0x151   :  { %1447 = vrcp.f32 %v1916_v62  ;;  %v842_v6 = vand.u32 2147483648, %v1891_v41  ;;  %vm838_vm13 = vmor %vm836_vm11, %vm837_vm10  ;;  %v854_v28 = vand.u32 2147483647, %v1916_v62  ;;  %v856_v29 = vand.u32 2147483648, %v1916_v62 }
 0x152   :  { %v1060_v7 = vmul.f32 %v1028_v0, %v1643_v17  ;;  %v1076_v8 = vmul.f32 %v1044_v1, %v1653_v19  ;;  %v1128_v9 = vsel %vm1126_vm5, %v1044_v1, 0.0  ;;  %v833_v10 = vsub.f32 1.0, %v832_v2 }
 0x153   :  { %v1144_v5 = vsel %vm1125_vm3, %v1028_v0, %v1128_v9  ;;  %1449 = vpow2.f32 %v715_v63  ;;  %v680_v17 = vmax.f32 %v622_v4, %v654_v59  ;;  %v843_v27 = vor.u32 1.1754944e-38, %v842_v6 }
 0x154   :  { %v1092_v11 = vadd.f32 %v1076_v8, %v1060_v7  ;;  %1160 = vst [vmem:[%s2362_s7 + $0x8] sm:$0xff] %v1144_v5  ;;  %v834_v12 = vmul.f32 %v1446_v60, %v833_v10  ;;  %1451 = vpow2.f32 %v763_v32  ;;  %vm850_vm15 = vweird.f32 %v1916_v62 }
 0x155   :  { %v696_v14 = vsub.f32 %v622_v4, %v680_v17  ;;  %v744_v15 = vsub.f32 %v654_v59, %v680_v17  ;;  %v857_v53 = vor.u32 1.1754944e-38, %v856_v29  ;;  %vm855_vm1 = vcmp.eq.f32.partialorder %v854_v28, 8.507059e+37 }
 0x156   :  { %1108 = vst [vmem:[%s2363_s6 + $0x8] sm:$0xff] %v1092_v11  ;;  %v835_v19 = vadd.f32 %v1446_v60, %v834_v12  ;;  %v656_v20 = vpop.xlane.xlu1 %655  ;;  %v624_v22 = vpop.xlane.xlu0 %623 }
 0x157   :  { %v1448_v25 = vpop.eup %1447  ;;  %v681_v31 = vmax.f32 %v624_v22, %v656_v20  ;;  %v717_v35 = vmul.f32 1.442695, %v696_v14  ;;  %v765_v39 = vmul.f32 1.442695, %v744_v15 }
 0x158   :  { %v839_v33 = vsel %vm838_vm13, %v1446_v60, %v835_v19  ;;  %v846_v34 = vmul.f32 %v1448_v25, %v1916_v62  ;;  %vm851_vm14 = vweird.f32 %v1448_v25 }
 0x159   :  { %v1945_v36 = vpop.eup %1449  ;;  %v844_v38 = vsel %vm1937_vm12, %v843_v27, %v839_v33  ;;  %v697_v40 = vsub.f32 %v624_v22, %v681_v31  ;;  %v745_v41 = vsub.f32 %v656_v20, %v681_v31  ;;  %1453 = vpow2.f32 %v717_v35  ;;  %vm852_vm0 = vmor %vm850_vm15, %vm851_vm14 }
 0x15a   :  { %v1949_v42 = vpop.eup %1451  ;;  %v1029_v43 = vmul.f32 %v1882_v30, %v844_v38  ;;  %v1045_v44 = vmul.f32 %v1884_v37, %v844_v38  ;;  %v847_v45 = vsub.f32 1.0, %v846_v34  ;;  %1455 = vpow2.f32 %v765_v39 }
 0x15b   :  { %v1955_v46 = vadd.f32 %v1949_v42, %v1945_v36  ;;  %v719_v47 = vmul.f32 1.442695, %v697_v40  ;;  %v767_v48 = vmul.f32 1.442695, %v745_v41 }
 0x15c   :  { %v1061_v49 = vmul.f32 %v1029_v43, %v1668_v24  ;;  %v1077_v50 = vmul.f32 %v1045_v44, %v1676_v26  ;;  %v1129_v51 = vsel %vm1126_vm5, %v1045_v44, 0.0  ;;  %v848_v52 = vmul.f32 %v1448_v25, %v847_v45 }
 0x15d   :  { %v1145_v30 = vsel %vm1125_vm3, %v1029_v43, %v1129_v51  ;;  %1457 = vrcp.f32 %v1955_v46  ;;  %v870_v17 = vand.u32 2147483648, %v1955_v46  ;;  %v868_v15 = vand.u32 2147483647, %v1955_v46  ;;  %v1523_v51 = vld [vmem:[%s2358_s0 + $0x20] sm:$0xff] }
 0x15e   :  { %v1093_v37 = vadd.f32 %v1077_v50, %v1061_v49  ;;  %1161 = vst [vmem:[%s2362_s7 + $0x10] sm:$0xff] %v1145_v30  ;;  %v849_v21 = vadd.f32 %v1448_v25, %v848_v52  ;;  %1459 = vpow2.f32 %v719_v47  ;;  %v658_v24 = vpop.xlane.xlu2 %657  ;;  %v626_v26 = vpop.xlane.xlu1 %625  ;;  %vm864_vm4 = vweird.f32 %v1955_v46 }
 0x15f   :  { %1461 = vpow2.f32 %v767_v48  ;;  %v682_v54 = vmax.f32 %v626_v26, %v658_v24  ;;  %v1969_v16 = vpop.eup %1453  ;;  %v871_v28 = vor.u32 1.1754944e-38, %v870_v17  ;;  %vm869_vm7 = vcmp.eq.f32.partialorder %v868_v15, 8.507059e+37 }
 0x160   :  { %1109 = vst [vmem:[%s2363_s6 + $0x10] sm:$0xff] %v1093_v37  ;;  %v853_v18 = vsel %vm852_vm0, %v1448_v25, %v849_v21  ;;  %v1974_v56 = vpop.eup %1455 }
 0x161   :  { %v858_v58 = vsel %vm855_vm1, %v857_v53, %v853_v18  ;;  %v698_v59 = vsub.f32 %v626_v26, %v682_v54  ;;  %v746_v60 = vsub.f32 %v658_v24, %v682_v54  ;;  %v1980_v63 = vadd.f32 %v1974_v56, %v1969_v16 }
 0x162   :  { %v1030_v61 = vmul.f32 %v1906_v55, %v858_v58  ;;  %v1046_v62 = vmul.f32 %v1909_v57, %v858_v58  ;;  %v1522_v55 = vld [vmem:[%s2358_s0 + $0x98] sm:$0xff] }
 0x163   :  { %v1458_v0 = vpop.eup %1457  ;;  %v721_v1 = vmul.f32 1.442695, %v698_v59  ;;  %v769_v2 = vmul.f32 1.442695, %v746_v60  ;;  %1463 = vrcp.f32 %v1980_v63  ;;  %v882_v38 = vand.u32 2147483647, %v1980_v63 }
 0x164   :  { %v1982_v32 = vpop.eup %1459  ;;  %v1062_v4 = vmul.f32 %v1521_v3, %v1030_v61  ;;  %v1078_v7 = vmul.f32 %v1522_v55, %v1046_v62  ;;  %v1130_v57 = vsel %vm1126_vm5, %v1046_v62, 0.0  ;;  %v860_v8 = vmul.f32 %v1458_v0, %v1955_v46 }
 0x165   :  { %v1993_v9 = vpop.eup %1461  ;;  %v1146_v10 = vsel %vm1125_vm3, %v1030_v61, %v1130_v57  ;;  %1465 = vpow2.f32 %v721_v1  ;;  %vm865_vm2 = vweird.f32 %v1458_v0  ;;  %v884_v39 = vand.u32 2147483648, %v1980_v63 }
 0x166   :  { %v1094_v5 = vadd.f32 %v1078_v7, %v1062_v4  ;;  %1162 = vst [vmem:[%s2362_s7 + $0x18] sm:$0xff] %v1146_v10  ;;  %v861_v6 = vsub.f32 1.0, %v860_v8  ;;  %v628_v11 = vpop.xlane.xlu2 %627  ;;  %v660_v12 = vpop.xlane.xlu0 %659  ;;  %v2004_v19 = vadd.f32 %v1993_v9, %v1982_v32  ;;  %1467 = vpow2.f32 %v769_v2  ;;  %vm866_vm6 = vmor %vm864_vm4, %vm865_vm2 }
 0x167   :  { %v683_v13 = vmax.f32 %v628_v11, %v660_v12  ;;  %vm878_vm9 = vweird.f32 %v1980_v63  ;;  %v885_v18 = vor.u32 1.1754944e-38, %v884_v39  ;;  %vm883_vm11 = vcmp.eq.f32.partialorder %v882_v38, 8.507059e+37 }
 0x168   :  { %1110 = vst [vmem:[%s2363_s6 + $0x18] sm:$0xff] %v1094_v5  ;;  %v862_v14 = vmul.f32 %v1458_v0, %v861_v6  ;;  %1469 = vrcp.f32 %v2004_v19  ;;  %v896_v26 = vand.u32 2147483647, %v2004_v19  ;;  %v898_v59 = vand.u32 2147483648, %v2004_v19 }
 0x169   :  { %v699_v22 = vsub.f32 %v628_v11, %v683_v13  ;;  %v747_v25 = vsub.f32 %v660_v12, %v683_v13  ;;  %v1464_v27 = vpop.eup %1463  ;;  %vm892_vm12 = vweird.f32 %v2004_v19  ;;  %v1525_v13 = vld [vmem:[%s2358_s0 + $0x28] sm:$0xff] }
 0x16a   :  { %v863_v20 = vadd.f32 %v1458_v0, %v862_v14  ;;  %v874_v31 = vmul.f32 %v1464_v27, %v1980_v63  ;;  %vm879_vm8 = vweird.f32 %v1464_v27  ;;  %vm2052_vm14 = vcmp.eq.f32.partialorder %v896_v26, 8.507059e+37 }
 0x16b   :  { %v723_v33 = vmul.f32 1.442695, %v699_v22  ;;  %v2013_v34 = vpop.eup %1465  ;;  %v771_v40 = vmul.f32 1.442695, %v747_v25  ;;  %vm880_vm10 = vmor %vm878_vm9, %vm879_vm8  ;;  %v899_v11 = vor.u32 1.1754944e-38, %v898_v59 }
 0x16c   :  { %v867_v29 = vsel %vm866_vm6, %v1458_v0, %v863_v20  ;;  %v2017_v41 = vpop.eup %1467  ;;  %v875_v45 = vsub.f32 1.0, %v874_v31 }
 0x16d   :  { %v872_v35 = vsel %vm869_vm7, %v871_v28, %v867_v29  ;;  %1471 = vpow2.f32 %v723_v33  ;;  %v2023_v49 = vadd.f32 %v2017_v41, %v2013_v34 }
 0x16e   :  { %v1031_v43 = vmul.f32 %v1945_v36, %v872_v35  ;;  %v1047_v44 = vmul.f32 %v1949_v42, %v872_v35  ;;  %v662_v46 = vpop.xlane.xlu1 %661  ;;  %v630_v47 = vpop.xlane.xlu0 %629  ;;  %1473 = vpow2.f32 %v771_v40  ;;  %v1524_v36 = vld [vmem:[%s2358_s0 + $0xa0] sm:$0xff]  ;;  %v876_v37 = vmul.f32 %v1464_v27, %v875_v45 }
 0x16f   :  { %v1470_v48 = vpop.eup %1469  ;;  %v684_v50 = vmax.f32 %v630_v47, %v662_v46  ;;  %1475 = vrcp.f32 %v2023_v49  ;;  %v912_v35 = vand.u32 2147483648, %v2023_v49  ;;  %vm906_vm1 = vweird.f32 %v2023_v49 }
 0x170   :  { %v1063_v52 = vmul.f32 %v1523_v51, %v1031_v43  ;;  %v1079_v42 = vmul.f32 %v1524_v36, %v1047_v44  ;;  %v1131_v30 = vsel %vm1126_vm5, %v1047_v44, 0.0  ;;  %v888_v24 = vmul.f32 %v1470_v48, %v2004_v19 }
 0x171   :  { %v1147_v21 = vsel %vm1125_vm3, %v1031_v43, %v1131_v30  ;;  %v877_v54 = vadd.f32 %v1464_v27, %v876_v37  ;;  %v700_v60 = vsub.f32 %v630_v47, %v684_v50  ;;  %v748_v61 = vsub.f32 %v662_v46, %v684_v50  ;;  %v1527_v43 = vld [vmem:[%s2358_s0 + $0x30] sm:$0xff] }
 0x172   :  { %v1095_v53 = vadd.f32 %v1079_v42, %v1063_v52  ;;  %1163 = vst [vmem:[%s2362_s7 + $0x20] sm:$0xff] %v1147_v21  ;;  %v889_v58 = vsub.f32 1.0, %v888_v24  ;;  %vm893_vm13 = vweird.f32 %v1470_v48 }
 0x173   :  { %v2044_v62 = vpop.eup %1471  ;;  %v881_v0 = vsel %vm880_vm10, %v1464_v27, %v877_v54  ;;  %v725_v57 = vmul.f32 1.442695, %v700_v60  ;;  %v773_v12 = vmul.f32 1.442695, %v748_v61  ;;  %vm894_vm15 = vmor %vm892_vm12, %vm893_vm13  ;;  %v910_v27 = vand.u32 2147483647, %v2023_v49 }
 0x174   :  { %1111 = vst [vmem:[%s2363_s6 + $0x20] sm:$0xff] %v1095_v53  ;;  %v2050_v1 = vpop.eup %1473  ;;  %v886_v63 = vsel %vm883_vm11, %v885_v18, %v881_v0  ;;  %v890_v2 = vmul.f32 %v1470_v48, %v889_v58 }
 0x175   :  { %v1032_v4 = vmul.f32 %v1969_v16, %v886_v63  ;;  %v1048_v55 = vmul.f32 %v1974_v56, %v886_v63  ;;  %v2060_v7 = vadd.f32 %v2050_v1, %v2044_v62  ;;  %v1476_v5 = vpop.eup %1475  ;;  %v1526_v16 = vld [vmem:[%s2358_s0 + $0xa8] sm:$0xff]  ;;  %vm2100_vm2 = vcmp.eq.f32.partialorder %v910_v27, 8.507059e+37 }
 0x176   :  { %v664_v8 = vpop.xlane.xlu2 %663  ;;  %v632_v10 = vpop.xlane.xlu1 %631  ;;  %v891_v6 = vadd.f32 %v1470_v48, %v890_v2  ;;  %v902_v20 = vmul.f32 %v1476_v5, %v2023_v49  ;;  %vm907_vm0 = vweird.f32 %v1476_v5  ;;  %v913_v49 = vor.u32 1.1754944e-38, %v912_v35 }
 0x177   :  { %v685_v17 = vmax.f32 %v632_v10, %v664_v8  ;;  %v1064_v14 = vmul.f32 %v1525_v13, %v1032_v4  ;;  %v1080_v56 = vmul.f32 %v1526_v16, %v1048_v55  ;;  %v1132_v15 = vsel %vm1126_vm5, %v1048_v55, 0.0  ;;  %vm908_vm4 = vmor %vm906_vm1, %vm907_vm0  ;;  %v1529_v55 = vld [vmem:[%s2358_s0 + $0x38] sm:$0xff] }
 0x178   :  { %v1148_v22 = vsel %vm1125_vm3, %v1032_v4, %v1132_v15  ;;  %v895_v25 = vsel %vm894_vm15, %v1470_v48, %v891_v6  ;;  %1477 = vrcp.f32 %v2060_v7  ;;  %v903_v19 = vsub.f32 1.0, %v902_v20 }
 0x179   :  { %v1096_v28 = vadd.f32 %v1080_v56, %v1064_v14  ;;  %1164 = vst [vmem:[%s2362_s7 + $0x28] sm:$0xff] %v1148_v22  ;;  %v900_v29 = vsel %vm2052_vm14, %v899_v11, %v895_v25  ;;  %1479 = vpow2.f32 %v725_v57  ;;  %v701_v39 = vsub.f32 %v632_v10, %v685_v17 }
 0x17a   :  { %v1033_v31 = vmul.f32 %v1982_v32, %v900_v29  ;;  %v1049_v33 = vmul.f32 %v1993_v9, %v900_v29  ;;  %v904_v38 = vmul.f32 %v1476_v5, %v903_v19  ;;  %1481 = vpow2.f32 %v773_v12  ;;  %v1528_v32 = vld [vmem:[%s2358_s0 + $0xb0] sm:$0xff] }
 0x17b   :  { %1112 = vst [vmem:[%s2363_s6 + $0x28] sm:$0xff] %v1096_v28  ;;  %v749_v40 = vsub.f32 %v664_v8, %v685_v17  ;;  %v727_v50 = vmul.f32 1.442695, %v701_v39  ;;  %v924_v53 = vand.u32 2147483647, %v2060_v7  ;;  %v926_v63 = vand.u32 2147483648, %v2060_v7 }
 0x17c   :  { %v1065_v44 = vmul.f32 %v1527_v43, %v1033_v31  ;;  %v1081_v9 = vmul.f32 %v1528_v32, %v1049_v33  ;;  %v1133_v45 = vsel %vm1126_vm5, %v1049_v33, 0.0  ;;  %v905_v47 = vadd.f32 %v1476_v5, %v904_v38  ;;  %v1531_v33 = vld [vmem:[%s2358_s0 + $0x40] sm:$0xff] }
 0x17d   :  { %v1149_v46 = vsel %vm1125_vm3, %v1033_v31, %v1133_v45  ;;  %v775_v30 = vmul.f32 1.442695, %v749_v40  ;;  %1483 = vpow2.f32 %v727_v50  ;;  %vm920_vm7 = vweird.f32 %v2060_v7  ;;  %v1532_v38 = vld [vmem:[%s2358_s0 + $0xc0] sm:$0xff] }
 0x17e   :  { %v634_v51 = vpop.xlane.xlu2 %633  ;;  %v666_v52 = vpop.xlane.xlu0 %665  ;;  %v1097_v42 = vadd.f32 %v1081_v9, %v1065_v44  ;;  %1165 = vst [vmem:[%s2362_s7 + $0x30] sm:$0xff] %v1149_v46  ;;  %v909_v24 = vsel %vm908_vm4, %v1476_v5, %v905_v47  ;;  %v927_v16 = vor.u32 1.1754944e-38, %v926_v63  ;;  %vm925_vm9 = vcmp.eq.f32.partialorder %v924_v53, 8.507059e+37 }
 0x17f   :  { %v1478_v36 = vpop.eup %1477  ;;  %v686_v37 = vmax.f32 %v634_v51, %v666_v52  ;;  %v914_v54 = vsel %vm2100_vm2, %v913_v49, %v909_v24  ;;  %1485 = vpow2.f32 %v775_v30 }
 0x180   :  { %v2108_v21 = vpop.eup %1479  ;;  %v916_v26 = vmul.f32 %v1478_v36, %v2060_v7  ;;  %1113 = vst [vmem:[%s2363_s6 + $0x30] sm:$0xff] %v1097_v42  ;;  %v1034_v60 = vmul.f32 %v2013_v34, %v914_v54  ;;  %v1050_v61 = vmul.f32 %v2017_v41, %v914_v54  ;;  %vm921_vm6 = vweird.f32 %v1478_v36  ;;  %v1530_v34 = vld [vmem:[%s2358_s0 + $0xb8] sm:$0xff] }
 0x181   :  { %v702_v18 = vsub.f32 %v634_v51, %v686_v37  ;;  %v750_v58 = vsub.f32 %v666_v52, %v686_v37  ;;  %v2117_v59 = vpop.eup %1481  ;;  %vm922_vm8 = vmor %vm920_vm7, %vm921_vm6 }
 0x182   :  { %v917_v0 = vsub.f32 1.0, %v916_v26  ;;  %v2124_v2 = vadd.f32 %v2117_v59, %v2108_v21  ;;  %v1066_v57 = vmul.f32 %v1529_v55, %v1034_v60  ;;  %v1082_v41 = vmul.f32 %v1530_v34, %v1050_v61 }
 0x183   :  { %v729_v3 = vmul.f32 1.442695, %v702_v18  ;;  %v777_v4 = vmul.f32 1.442695, %v750_v58  ;;  %v1134_v8 = vsel %vm1126_vm5, %v1050_v61, 0.0  ;;  %v2137_v6 = vpop.eup %1483 }
 0x184   :  { %v918_v10 = vmul.f32 %v1478_v36, %v917_v0  ;;  %v1150_v5 = vsel %vm1125_vm3, %v1034_v60, %v1134_v8  ;;  %1487 = vrcp.f32 %v2124_v2  ;;  %v1098_v11 = vadd.f32 %v1082_v41, %v1066_v57  ;;  %v1534_v57 = vld [vmem:[%s2358_s0 + $0xc8] sm:$0xff] }
 0x185   :  { %1166 = vst [vmem:[%s2362_s7 + $0x38] sm:$0xff] %v1150_v5  ;;  %1489 = vpow2.f32 %v729_v3  ;;  %v2143_v14 = vpop.eup %1485  ;;  %v940_v45 = vand.u32 2147483648, %v2124_v2  ;;  %v938_v50 = vand.u32 2147483647, %v2124_v2  ;;  %vm934_vm11 = vweird.f32 %v2124_v2 }
 0x186   :  { %v919_v12 = vadd.f32 %v1478_v36, %v918_v10  ;;  %v668_v17 = vpop.xlane.xlu1 %667  ;;  %v636_v13 = vpop.xlane.xlu0 %635  ;;  %1491 = vpow2.f32 %v777_v4  ;;  %1114 = vst [vmem:[%s2363_s6 + $0x38] sm:$0xff] %v1098_v11  ;;  %v2151_v20 = vadd.f32 %v2143_v14, %v2137_v6 }
 0x187   :  { %v687_v56 = vmax.f32 %v636_v13, %v668_v17  ;;  %v941_v49 = vor.u32 1.1754944e-38, %v940_v45  ;;  %vm939_vm13 = vcmp.eq.f32.partialorder %v938_v50, 8.507059e+37 }
 0x188   :  { %v923_v15 = vsel %vm922_vm8, %v1478_v36, %v919_v12  ;;  %1493 = vrcp.f32 %v2151_v20  ;;  %v952_v42 = vand.u32 2147483647, %v2151_v20  ;;  %v954_v37 = vand.u32 2147483648, %v2151_v20 }
 0x189   :  { %v928_v7 = vsel %vm925_vm9, %v927_v16, %v923_v15  ;;  %v703_v22 = vsub.f32 %v636_v13, %v687_v56  ;;  %v751_v19 = vsub.f32 %v668_v17, %v687_v56  ;;  %vm948_vm15 = vweird.f32 %v2151_v20 }
 0x18a   :  { %v1035_v25 = vmul.f32 %v2044_v62, %v928_v7  ;;  %v1051_v27 = vmul.f32 %v2050_v1, %v928_v7  ;;  %v1488_v28 = vpop.eup %1487  ;;  %vm2195_vm0 = vcmp.eq.f32.partialorder %v952_v42, 8.507059e+37  ;;  %v955_v3 = vor.u32 1.1754944e-38, %v954_v37  ;;  %v1537_v37 = vld [vmem:[%s2358_s0 + $0x58] sm:$0xff] }
 0x18b   :  { %v731_v29 = vmul.f32 1.442695, %v703_v22  ;;  %v2156_v31 = vpop.eup %1489  ;;  %v930_v1 = vmul.f32 %v1488_v28, %v2124_v2  ;;  %v779_v46 = vmul.f32 1.442695, %v751_v19  ;;  %vm935_vm10 = vweird.f32 %v1488_v28 }
 0x18c   :  { %v1067_v35 = vmul.f32 %v1531_v33, %v1035_v25  ;;  %v1083_v39 = vmul.f32 %v1532_v38, %v1051_v27  ;;  %v1135_v62 = vsel %vm1126_vm5, %v1051_v27, 0.0  ;;  %v2167_v40 = vpop.eup %1491  ;;  %vm936_vm12 = vmor %vm934_vm11, %vm935_vm10 }
 0x18d   :  { %v1151_v43 = vsel %vm1125_vm3, %v1035_v25, %v1135_v62  ;;  %v931_v32 = vsub.f32 1.0, %v930_v1  ;;  %v2176_v9 = vadd.f32 %v2167_v40, %v2156_v31  ;;  %1495 = vpow2.f32 %v731_v29 }
 0x18e   :  { %v1099_v44 = vadd.f32 %v1083_v39, %v1067_v35  ;;  %1167 = vst [vmem:[%s2362_s7 + $0x40] sm:$0xff] %v1151_v43  ;;  %v1494_v47 = vpop.eup %1493  ;;  %v638_v0 = vpop.xlane.xlu1 %637 }
 0x18f   :  { %v932_v48 = vmul.f32 %v1488_v28, %v931_v32  ;;  %1497 = vrcp.f32 %v2176_v9  ;;  %v944_v52 = vmul.f32 %v1494_v47, %v2151_v20  ;;  %vm949_vm14 = vweird.f32 %v1494_v47 }
 0x190   :  { %1115 = vst [vmem:[%s2363_s6 + $0x40] sm:$0xff] %v1099_v44  ;;  %v2184_v51 = vpop.xlane.xlu2 %639  ;;  %1499 = vpow2.f32 %v779_v46  ;;  %v966_v55 = vand.u32 2147483647, %v2176_v9  ;;  %vm950_vm1 = vmor %vm948_vm15, %vm949_vm14  ;;  %v968_v15 = vand.u32 2147483648, %v2176_v9  ;;  %vm962_vm4 = vweird.f32 %v2176_v9 }
 0x191   :  { %v933_v36 = vadd.f32 %v1488_v28, %v932_v48  ;;  %v945_v30 = vsub.f32 1.0, %v944_v52 }
 0x192   :  { %vm967_vm7 = vcmp.eq.f32.partialorder %v966_v55, 8.507059e+37  ;;  %v969_v38 = vor.u32 1.1754944e-38, %v968_v15 }
 0x193   :  { %v937_v24 = vsel %vm936_vm12, %v1488_v28, %v933_v36  ;;  %v2190_v26 = vpop.eup %1495  ;;  %v946_v54 = vmul.f32 %v1494_v47, %v945_v30  ;;  %v1535_v28 = vld [vmem:[%s2358_s0 + $0x50] sm:$0xff] }
 0x194   :  { %v942_v53 = vsel %vm939_vm13, %v941_v49, %v937_v24 }
 0x195   :  { %v1498_v18 = vpop.eup %1497  ;;  %v1036_v58 = vmul.f32 %v2108_v21, %v942_v53  ;;  %v1052_v60 = vmul.f32 %v2117_v59, %v942_v53  ;;  %v947_v2 = vadd.f32 %v1494_v47, %v946_v54  ;;  %v1533_v21 = vld [vmem:[%s2358_s0 + $0x48] sm:$0xff] }
 0x196   :  { %v2199_v63 = vpop.eup %1499  ;;  %v958_v4 = vmul.f32 %v1498_v18, %v2176_v9  ;;  %vm963_vm2 = vweird.f32 %v1498_v18 }
 0x197   :  { %v1068_v59 = vmul.f32 %v1533_v21, %v1036_v58  ;;  %v1084_v34 = vmul.f32 %v1534_v57, %v1052_v60  ;;  %v1136_v41 = vsel %vm1126_vm5, %v1052_v60, 0.0  ;;  %v2214_v8 = vadd.f32 %v2199_v63, %v2190_v26  ;;  %vm964_vm6 = vmor %vm962_vm4, %vm963_vm2 }
 0x198   :  { %v670_v10 = vpop.xlane.xlu2 %669  ;;  %v642_v5 = vpop.xlane.xlu0 %641  ;;  %v1152_v11 = vsel %vm1125_vm3, %v1036_v58, %v1136_v41  ;;  %v951_v12 = vsel %vm950_vm1, %v1494_v47, %v947_v2  ;;  %v959_v17 = vsub.f32 1.0, %v958_v4 }
 0x199   :  { %v688_v13 = vmax.f32 %v638_v0, %v670_v10  ;;  %v1100_v16 = vadd.f32 %v1084_v34, %v1068_v59  ;;  %1168 = vst [vmem:[%s2362_s7 + $0x48] sm:$0xff] %v1152_v11  ;;  %v956_v56 = vsel %vm2195_vm0, %v955_v3, %v951_v12  ;;  %1501 = vrcp.f32 %v2214_v8 }
 0x19a   :  { %v1037_v20 = vmul.f32 %v2137_v6, %v956_v56  ;;  %v1053_v7 = vmul.f32 %v2143_v14, %v956_v56  ;;  %v960_v22 = vmul.f32 %v1498_v18, %v959_v17  ;;  %v1536_v6 = vld [vmem:[%s2358_s0 + $0xd0] sm:$0xff]  ;;  %v980_v46 = vand.u32 2147483647, %v2214_v8 }
 0x19b   :  { %1116 = vst [vmem:[%s2363_s6 + $0x48] sm:$0xff] %v1100_v16  ;;  %v704_v25 = vsub.f32 %v638_v0, %v688_v13  ;;  %v752_v27 = vsub.f32 %v670_v10, %v688_v13  ;;  %v982_v36 = vand.u32 2147483648, %v2214_v8  ;;  %vm976_vm9 = vweird.f32 %v2214_v8  ;;  %v1540_v16 = vld [vmem:[%s2358_s0 + $0xe0] sm:$0xff] }
 0x19c   :  { %v1069_v29 = vmul.f32 %v1535_v28, %v1037_v20  ;;  %v1085_v14 = vmul.f32 %v1536_v6, %v1053_v7  ;;  %v1137_v19 = vsel %vm1126_vm5, %v1053_v7, 0.0  ;;  %v961_v33 = vadd.f32 %v1498_v18, %v960_v22 }
 0x19d   :  { %v1153_v35 = vsel %vm1125_vm3, %v1037_v20, %v1137_v19  ;;  %v733_v39 = vmul.f32 1.442695, %v704_v25  ;;  %v781_v44 = vmul.f32 1.442695, %v752_v27  ;;  %v983_v57 = vor.u32 1.1754944e-38, %v982_v36 }
 0x19e   :  { %v674_v62 = vpop.xlane.xlu1 %673  ;;  %v1101_v1 = vadd.f32 %v1085_v14, %v1069_v29  ;;  %1169 = vst [vmem:[%s2362_s7 + $0x50] sm:$0xff] %v1153_v35  ;;  %v965_v43 = vsel %vm964_vm6, %v1498_v18, %v961_v33  ;;  %vm981_vm11 = vcmp.eq.f32.partialorder %v980_v46, 8.507059e+37 }
 0x19f   :  { %v690_v32 = vmax.f32 %v642_v5, %v674_v62  ;;  %v1502_v9 = vpop.eup %1501  ;;  %v970_v45 = vsel %vm967_vm7, %v969_v38, %v965_v43  ;;  %1503 = vpow2.f32 %v733_v39 }
 0x1a0   :  { %v672_v47 = vpop.xlane.xlu0 %671  ;;  %1117 = vst [vmem:[%s2363_s6 + $0x50] sm:$0xff] %v1101_v1  ;;  %v1038_v48 = vmul.f32 %v2156_v31, %v970_v45  ;;  %v1054_v50 = vmul.f32 %v2167_v40, %v970_v45  ;;  %v972_v52 = vmul.f32 %v1502_v9, %v2214_v8  ;;  %1505 = vpow2.f32 %v781_v44  ;;  %v1538_v31 = vld [vmem:[%s2358_s0 + $0xd8] sm:$0xff]  ;;  %v1539_v8 = vld [vmem:[%s2358_s0 + $0x60] sm:$0xff] }
 0x1a1   :  { %v706_v42 = vsub.f32 %v642_v5, %v690_v32  ;;  %v754_v49 = vsub.f32 %v674_v62, %v690_v32  ;;  %v689_v30 = vmax.f32 %v2184_v51, %v672_v47  ;;  %vm977_vm8 = vweird.f32 %v1502_v9 }
 0x1a2   :  { %v1070_v24 = vmul.f32 %v1537_v37, %v1038_v48  ;;  %v1086_v53 = vmul.f32 %v1538_v31, %v1054_v50  ;;  %v1138_v40 = vsel %vm1126_vm5, %v1054_v50, 0.0  ;;  %v973_v54 = vsub.f32 1.0, %v972_v52  ;;  %vm978_vm10 = vmor %vm976_vm9, %vm977_vm8 }
 0x1a3   :  { %v1154_v18 = vsel %vm1125_vm3, %v1038_v48, %v1138_v40  ;;  %v737_v58 = vmul.f32 1.442695, %v706_v42  ;;  %v785_v60 = vmul.f32 1.442695, %v754_v49  ;;  %v705_v61 = vsub.f32 %v2184_v51, %v689_v30 }
 0x1a4   :  { %v1102_v0 = vadd.f32 %v1086_v53, %v1070_v24  ;;  %1170 = vst [vmem:[%s2362_s7 + $0x58] sm:$0xff] %v1154_v18  ;;  %v974_v2 = vmul.f32 %v1502_v9, %v973_v54  ;;  %v753_v3 = vsub.f32 %v672_v47, %v689_v30  ;;  %v1541_v30 = vld [vmem:[%s2358_s0 + $0x68] sm:$0xff] }
 0x1a5   :  { %v1504_v4 = vpop.eup %1503  ;;  %1507 = vpow2.f32 %v737_v58  ;;  %v735_v55 = vmul.f32 1.442695, %v705_v61  ;;  %v1542_v24 = vld [vmem:[%s2358_s0 + $0xe8] sm:$0xff] }
 0x1a6   :  { %1118 = vst [vmem:[%s2363_s6 + $0x58] sm:$0xff] %v1102_v0  ;;  %v975_v21 = vadd.f32 %v1502_v9, %v974_v2  ;;  %1509 = vpow2.f32 %v785_v60  ;;  %v783_v51 = vmul.f32 1.442695, %v753_v3  ;;  %v1506_v59 = vpop.eup %1505 }
 0x1a7   :  { %1511 = vpow2.f32 %v735_v55  ;;  %v800_v41 = vadd.f32 %v1506_v59, %v1504_v4  ;;  %v1543_v55 = vld [vmem:[%s2358_s0 + $0x78] sm:$0xff] }
 0x1a8   :  { %v979_v34 = vsel %vm978_vm10, %v1502_v9, %v975_v21  ;;  %1513 = vpow2.f32 %v783_v51  ;;  %v1544_v51 = vld [vmem:[%s2358_s0 + $0xf8] sm:$0xff] }
 0x1a9   :  { %v984_v10 = vsel %vm981_vm11, %v983_v57, %v979_v34  ;;  %1515 = vrcp.f32 %v800_v41  ;;  %v996_v6 = vand.u32 2147483648, %v800_v41  ;;  %v994_v33 = vand.u32 2147483647, %v800_v41 }
 0x1aa   :  { %v1039_v5 = vmul.f32 %v2190_v26, %v984_v10  ;;  %v1055_v11 = vmul.f32 %v2199_v63, %v984_v10  ;;  %vm990_vm13 = vweird.f32 %v800_v41 }
 0x1ab   :  { %v2273_v12 = vpop.eup %1507  ;;  %v997_v1 = vor.u32 1.1754944e-38, %v996_v6  ;;  %vm995_vm15 = vcmp.eq.f32.partialorder %v994_v33, 8.507059e+37 }
 0x1ac   :  { %v2275_v17 = vpop.eup %1509  ;;  %v1071_v13 = vmul.f32 %v1539_v8, %v1039_v5  ;;  %v1087_v56 = vmul.f32 %v1540_v16, %v1055_v11  ;;  %v1139_v26 = vsel %vm1126_vm5, %v1055_v11, 0.0  ;;  %v1546_v8 = vld [vmem:[%s2358_s0 + $0xf0] sm:$0xff] }
 0x1ad   :  { %v2285_v15 = vpop.eup %1511  ;;  %v1155_v63 = vsel %vm1125_vm3, %v1039_v5, %v1139_v26  ;;  %v802_v20 = vadd.f32 %v2275_v17, %v2273_v12 }
 0x1ae   :  { %v2291_v7 = vpop.eup %1513  ;;  %v1103_v22 = vadd.f32 %v1087_v56, %v1071_v13  ;;  %1171 = vst [vmem:[%s2362_s7 + $0x60] sm:$0xff] %v1155_v63 }
 0x1af   :  { %1517 = vrcp.f32 %v802_v20  ;;  %v1516_v25 = vpop.eup %1515  ;;  %v801_v27 = vadd.f32 %v2291_v7, %v2285_v15  ;;  %v1024_v39 = vand.u32 2147483648, %v802_v20  ;;  %vm1018_vm0 = vweird.f32 %v802_v20 }
 0x1b0   :  { %1119 = vst [vmem:[%s2363_s6 + $0x60] sm:$0xff] %v1103_v22  ;;  %v986_v28 = vmul.f32 %v1516_v25, %v800_v41  ;;  %vm991_vm12 = vweird.f32 %v1516_v25  ;;  %v1022_v46 = vand.u32 2147483647, %v802_v20 }
 0x1b1   :  { %1519 = vrcp.f32 %v801_v27  ;;  %vm992_vm14 = vmor %vm990_vm13, %vm991_vm12  ;;  %v1025_v50 = vor.u32 1.1754944e-38, %v1024_v39  ;;  %v1008_v42 = vand.u32 2147483647, %v801_v27  ;;  %v1010_v49 = vand.u32 2147483648, %v801_v27 }
 0x1b2   :  { %v987_v29 = vsub.f32 1.0, %v986_v28  ;;  %vm1023_vm6 = vcmp.eq.f32.partialorder %v1022_v46, 8.507059e+37  ;;  %vm1004_vm7 = vweird.f32 %v801_v27 }
 0x1b3   :  { %v1011_v3 = vor.u32 1.1754944e-38, %v1010_v49  ;;  %vm1009_vm9 = vcmp.eq.f32.partialorder %v1008_v42, 8.507059e+37 }
 0x1b4   :  { %v988_v19 = vmul.f32 %v1516_v25, %v987_v29 }
 0x1b5   :  { %v1518_v14 = vpop.eup %1517 }
 0x1b6   :  { %v1014_v35 = vmul.f32 %v1518_v14, %v802_v20  ;;  %v989_v38 = vadd.f32 %v1516_v25, %v988_v19  ;;  %vm1019_vm1 = vweird.f32 %v1518_v14 }
 0x1b7   :  { %v1520_v62 = vpop.eup %1519  ;;  %vm1020_vm4 = vmor %vm1018_vm0, %vm1019_vm1 }
 0x1b8   :  { %v1015_v43 = vsub.f32 1.0, %v1014_v35  ;;  %v993_v44 = vsel %vm992_vm14, %v1516_v25, %v989_v38  ;;  %v1000_v32 = vmul.f32 %v1520_v62, %v801_v27  ;;  %vm1005_vm2 = vweird.f32 %v1520_v62 }
 0x1b9   :  { %v998_v9 = vsel %vm995_vm15, %v997_v1, %v993_v44  ;;  %vm1006_vm8 = vmor %vm1004_vm7, %vm1005_vm2 }
 0x1ba   :  { %v1016_v45 = vmul.f32 %v1518_v14, %v1015_v43  ;;  %v1040_v47 = vmul.f32 %v1504_v4, %v998_v9  ;;  %v1056_v48 = vmul.f32 %v1506_v59, %v998_v9  ;;  %v1001_v52 = vsub.f32 1.0, %v1000_v32 }
 0x1bc   :  { %v1017_v36 = vadd.f32 %v1518_v14, %v1016_v45  ;;  %v1072_v37 = vmul.f32 %v1541_v30, %v1040_v47  ;;  %v1088_v31 = vmul.f32 %v1542_v24, %v1056_v48  ;;  %v1140_v53 = vsel %vm1126_vm5, %v1056_v48, 0.0 }
 0x1bd   :  { %v1002_v40 = vmul.f32 %v1520_v62, %v1001_v52  ;;  %v1156_v54 = vsel %vm1125_vm3, %v1040_v47, %v1140_v53 }
 0x1be   :  { %v1021_v18 = vsel %vm1020_vm4, %v1518_v14, %v1017_v36  ;;  %v1104_v58 = vadd.f32 %v1088_v31, %v1072_v37  ;;  %1172 = vst [vmem:[%s2362_s7 + $0x68] sm:$0xff] %v1156_v54 }
 0x1bf   :  { %v1026_v60 = vsel %vm1023_vm6, %v1025_v50, %v1021_v18  ;;  %v1003_v61 = vadd.f32 %v1520_v62, %v1002_v40 }
 0x1c0   :  { %v1042_v0 = vmul.f32 %v2273_v12, %v1026_v60  ;;  %v1058_v2 = vmul.f32 %v2275_v17, %v1026_v60  ;;  %1120 = vst [vmem:[%s2363_s6 + $0x68] sm:$0xff] %v1104_v58  ;;  %v1545_v12 = vld [vmem:[%s2358_s0 + $0x70] sm:$0xff] }
 0x1c1   :  { %v1007_v4 = vsel %vm1006_vm8, %v1520_v62, %v1003_v61 }
 0x1c2   :  { %v1074_v21 = vmul.f32 %v1543_v55, %v1042_v0  ;;  %v1090_v59 = vmul.f32 %v1544_v51, %v1058_v2  ;;  %v1142_v57 = vsel %vm1126_vm5, %v1058_v2, 0.0  ;;  %v1012_v34 = vsel %vm1009_vm9, %v1011_v3, %v1007_v4 }
 0x1c3   :  { %v1158_v41 = vsel %vm1125_vm3, %v1042_v0, %v1142_v57  ;;  %v1041_v10 = vmul.f32 %v2285_v15, %v1012_v34  ;;  %v1057_v5 = vmul.f32 %v2291_v7, %v1012_v34 }
 0x1c4   :  { %v1106_v11 = vadd.f32 %v1090_v59, %v1074_v21  ;;  %1174 = vst [vmem:[%s2362_s7 + $0x78] sm:$0xff] %v1158_v41 }
 0x1c5   :  { %v1073_v17 = vmul.f32 %v1545_v12, %v1041_v10  ;;  %v1089_v13 = vmul.f32 %v1546_v8, %v1057_v5  ;;  %v1141_v16 = vsel %vm1126_vm5, %v1057_v5, 0.0 }
 0x1c6   :  { %1122 = vst [vmem:[%s2363_s6 + $0x78] sm:$0xff] %v1106_v11  ;;  %v1157_v56 = vsel %vm1125_vm3, %v1041_v10, %v1141_v16 }
 0x1c7   :  { %v1105_v26 = vadd.f32 %v1089_v13, %v1073_v17  ;;  %1173 = vst [vmem:[%s2362_s7 + $0x70] sm:$0xff] %v1157_v56 }
 0x1c9   :  { %1121 = vst [vmem:[%s2363_s6 + $0x70] sm:$0xff] %v1105_v26 }

</bundles_post_ra>
